<compile_context>
chip_gen: v7x
topology: tpu7x:2x2x1
jax: 0.10.0
libtpu: 0.0.40
codegen_flags: <defaults>
</compile_context>

<pallas_src>
import jax
import jax.numpy as jnp
from jax.experimental import pallas as pl
from jax.experimental.pallas import tpu as pltpu


# ---------------------------------------------------------------------------
# Static layout (pure Python ints; shared by the offline packer and the wrapper)
# ---------------------------------------------------------------------------
def make_layout(board, channels, hidden1, hidden2, action_size, *, store_off=8):
    H = W = board
    Hp, Wp = H + 2, W + 2
    Ho = Wo = board - 2                       # conv4 (valid) output spatial size
    Lc = Wp * channels                        # lanes of a same-pad conv activation
    Lv = Wo * channels                        # lanes of the conv4 output
    Apad = ((action_size + 127) // 128) * 128
    Lh = Apad + 128                           # fused head width: [0,Apad)=pi, Apad=v
    LW = ((max(Lc, Lv, hidden1, hidden2, Lh) + 127) // 128) * 128

    rnd16 = lambda n: ((n + 15) // 16) * 16   # bf16 sublane-tile aligned row offsets
    row_off, r = {}, 0
    for name, k in (('c1', 3 * Wp), ('c2', 3 * Lc), ('c3', 3 * Lc), ('c4', 3 * Lc),
                    ('fc1', Ho * Lv), ('fc2', hidden1), ('head', hidden2)):
        row_off[name] = r
        r += rnd16(k)

    assert store_off % 8 == 0 and store_off >= max(2, Ho - 1)
    return dict(H=H, W=W, Hp=Hp, Wp=Wp, Ho=Ho, Wo=Wo, C=channels,
                Lc=Lc, Lv=Lv, H1=hidden1, H2=hidden2,
                A=action_size, Apad=Apad, Lh=Lh, LW=LW,
                row_off=row_off, w_rows=rnd16(r), OFF=store_off)


# ---------------------------------------------------------------------------
# Wrapper: one pallas_call for the whole network
# ---------------------------------------------------------------------------
def tictactoe_forward(x, w_slab, vec_slab, cfg):
    """x: (B, H, W) board (matches the PyTorch forward before unsqueeze)."""
    B, H, W = x.shape
    Hp, Wp = cfg['Hp'], cfg['Wp']
    Lc, Lv, Ho = cfg['Lc'], cfg['Lv'], cfg['Ho']
    H1, H2 = cfg['H1'], cfg['H2']
    A, Apad, Lh = cfg['A'], cfg['Apad'], cfg['Lh']
    ro, OFF = cfg['row_off'], cfg['OFF']
    R = B * Hp
    SR = OFF + R + OFF                       # scratch rows: halo above/below interior

    # Only wrapper-side prep: lay the board out as (batch*padded rows, padded cols).
    x2d = jnp.pad(x, ((0, 0), (1, 1), (1, 1))).reshape(R, Wp)

    def kernel(x_ref, w_ref, vec_ref, pi_ref, v_ref, xs_ref):
        f32 = jnp.float32

        # Zero the staging scratch ONCE: halo rows supply the implicit zero
        # row-padding for every layer (stage() only rewrites the interior).
        xs_ref[...] = jnp.zeros(xs_ref.shape, xs_ref.dtype)

        # Row mask (1.0 on rows that hold a real board row), built in-kernel.
        ri = jax.lax.broadcasted_iota(jnp.int32, (R, 1), 0) % Hp
        rm = ((ri >= 1) & (ri <= H)).astype(f32)

        def stage(val, lanes):
            xs_ref[OFF:OFF + R, 0:lanes] = val

        def band_lhs(lanes, shifts):
            # im2row: lane-concatenate row-shifted reads (halo rows give zero pad),
            # cast to bf16 right before feeding the MXU.
            parts = [xs_ref[OFF + d:OFF + d + R, 0:lanes] for d in shifts]
            return jnp.concatenate(parts, axis=1).astype(jnp.bfloat16)

        def wslice(name, k, n):
            r0 = ro[name]
            return w_ref[r0:r0 + k, 0:n]

        def vrow(i, n):
            return vec_ref[i:i + 1, 0:n]

        def conv_same(val, name, vi, lanes_in):
            # 3x3 conv, pad=1 -> ONE (R, 3*lanes_in) x (3*lanes_in, Lc) matmul
            # + folded BN + ReLU. s/t are zero on pad columns; rm zeroes pad rows.
            stage(val, lanes_in)
            y = jnp.dot(band_lhs(lanes_in, (-1, 0, 1)),
                        wslice(name, 3 * lanes_in, Lc),
                        preferred_element_type=f32)
            return jnp.maximum(y * vrow(vi, Lc) + vrow(vi + 1, Lc), 0.0) * rm

        # ---- conv1 / conv2 / conv3 (3x3, padding=1, folded BN, ReLU) ----------
        h = conv_same(x_ref[...], 'c1', 0, Wp)
        h = conv_same(h, 'c2', 2, Lc)
        h = conv_same(h, 'c3', 4, Lc)

        # ---- conv4 (3x3, valid, folded BN, ReLU) -------------------------------
        stage(h, Lc)
        h = jnp.dot(band_lhs(Lc, (0, 1, 2)), wslice('c4', 3 * Lc, Lv),
                    preferred_element_type=f32)
        h = jnp.maximum(h * vrow(6, Lv) + vrow(7, Lv), 0.0)

        # ---- fc1: ONE matmul over the lane-concatenated Ho row-shifted rows ----
        # (row b*Hp+1 then carries sample b's full flattened-feature result)
        stage(h, Lv)
        h = jnp.dot(band_lhs(Lv, tuple(range(Ho))), wslice('fc1', Ho * Lv, H1),
                    preferred_element_type=f32)
        h = jnp.maximum(h * vrow(8, H1) + vrow(9, H1), 0.0)
        # dropout: identity (eval mode)

        # ---- gather the one real feature row per sample (static slices) --------
        h = jnp.concatenate([h[b * Hp + 1:b * Hp + 2, :] for b in range(B)], axis=0)

        # ---- fc2 ----------------------------------------------------------------
        h = jnp.dot(h.astype(jnp.bfloat16), wslice('fc2', H1, H2),
                    preferred_element_type=f32)
        h = jnp.maximum(h * vrow(10, H2) + vrow(11, H2), 0.0)
        # dropout: identity (eval mode)

        # ---- fused pi / v head --------------------------------------------------
        # lanes [0, Apad): padded policy logits (-1e30 bias on pads); lane Apad: v.
        logits = jnp.dot(h.astype(jnp.bfloat16), wslice('head', H2, Lh),
                         preferred_element_type=f32) + vrow(12, Lh)
        zp = logits[:, 0:Apad]
        zp = zp - jnp.max(zp, axis=-1, keepdims=True)
        lse = jnp.log(jnp.sum(jnp.exp(zp), axis=-1, keepdims=True))
        pi_ref[...] = (zp - lse).astype(pi_ref.dtype)          # lane-dense (B, Apad)
        v_ref[...] = jnp.tanh(logits[:, Apad:Apad + 1]).astype(v_ref.dtype)

    pi_pad, v = pl.pallas_call(
        kernel,
        out_shape=(jax.ShapeDtypeStruct((B, Apad), jnp.float32),
                   jax.ShapeDtypeStruct((B, 1), jnp.float32)),
        scratch_shapes=[pltpu.VMEM((SR, Lc), jnp.float32)],
    )(x2d, w_slab, vec_slab)
    return pi_pad[:, :A], v


# ---------------------------------------------------------------------------
# Offline parameter packing: one bf16 weight slab + one f32 vector slab
# ---------------------------------------------------------------------------
def prepare_pallas_params(p, cfg):
    W, Wp = cfg['W'], cfg['Wp']
    Ho, Wo, C = cfg['Ho'], cfg['Wo'], cfg['C']
    H1, H2 = cfg['H1'], cfg['H2']
    A, Apad, Lh, LW = cfg['A'], cfg['Apad'], cfg['Lh'], cfg['LW']
    ro, WR = cfg['row_off'], cfg['w_rows']
    assert p['w1'].shape[1] == 1, "conv1 input is the unsqueezed single-channel board"

    col_valid = ((jnp.arange(Wp) >= 1) & (jnp.arange(Wp) <= W)).astype(jnp.float32)

    def band_same(w):     # (9, Cin, Cout) -> (3*Wp*Cin, Wp*Cout), dh-major K stack
        mats = []
        for dh in range(3):
            a = 0.0
            for dw in range(3):
                m = jnp.eye(Wp, Wp, k=1 - dw, dtype=jnp.float32) * col_valid[None, :]
                a = a + jnp.kron(m, w[dh * 3 + dw])
            mats.append(a)
        return jnp.concatenate(mats, axis=0)

    def band_valid(w):    # (9, Cin, Cout) -> (3*Wp*Cin, Wo*Cout)
        mats = []
        for dh in range(3):
            a = 0.0
            for dw in range(3):
                m = jnp.eye(Wp, Wo, k=-(dw + 1), dtype=jnp.float32)
                a = a + jnp.kron(m, w[dh * 3 + dw])
            mats.append(a)
        return jnp.concatenate(mats, axis=0)

    # fc1: canonical rows are NCHW-flattened (c, h', w'); the kernel's im2row LHS is
    # (h' major, then w', then c), so permute the weight rows to match.
    fc1 = (p['fc1_wt'].reshape(C, Ho, Wo, H1).transpose(1, 2, 0, 3)
           .reshape(Ho * Wo * C, H1))

    # fused head weight: [:, :A] = pi, [:, Apad] = v, rest zero
    head_w = jnp.zeros((H2, Lh), jnp.float32)
    head_w = head_w.at[:, 0:A].set(p['pi_wt'])
    head_w = head_w.at[:, Apad:Apad + 1].set(p['v_w'].T)

    w_slab = jnp.zeros((WR, LW), jnp.float32)

    def put(slab, name, mat):
        r0 = ro[name]
        return slab.at[r0:r0 + mat.shape[0], 0:mat.shape[1]].set(mat)

    w_slab = put(w_slab, 'c1', band_same(p['w1']))
    w_slab = put(w_slab, 'c2', band_same(p['w2']))
    w_slab = put(w_slab, 'c3', band_same(p['w3']))
    w_slab = put(w_slab, 'c4', band_valid(p['w4']))
    w_slab = put(w_slab, 'fc1', fc1)
    w_slab = put(w_slab, 'fc2', p['fc2_wt'])
    w_slab = put(w_slab, 'head', head_w)
    w_slab = w_slab.astype(jnp.bfloat16)            # MXU operands travel as bf16

    def tile_same(v):     # (1, C) -> (Lc,), zeroed on pad columns
        return jnp.kron(col_valid, v[0])

    def tile_valid(v):    # (1, C) -> (Lv,)
        return jnp.tile(v[0], Wo)

    head_b = jnp.zeros((Lh,), jnp.float32)
    head_b = head_b.at[0:Apad].set(-1e30)           # pad logits -> exp == 0
    head_b = head_b.at[0:A].set(p['pi_b'][0])
    head_b = head_b.at[Apad].set(p['v_b'][0, 0])

    vec_slab = jnp.zeros((16, LW), jnp.float32)     # epilogue math stays f32
    rows = [tile_same(p['s1']), tile_same(p['t1']),
            tile_same(p['s2']), tile_same(p['t2']),
            tile_same(p['s3']), tile_same(p['t3']),
            tile_valid(p['s4']), tile_valid(p['t4']),
            p['fc1_s'][0], p['fc1_t'][0], p['fc2_s'][0], p['fc2_t'][0], head_b]
    for i, r in enumerate(rows):
        vec_slab = vec_slab.at[i, 0:r.shape[0]].set(r)
    return w_slab, vec_slab


# ---------------------------------------------------------------------------
# Canonical parameter construction (deterministic, synthetic)
# ---------------------------------------------------------------------------
def _bn_fold(gamma, beta, mean, var, bias, eps=1e-5):
    s = gamma / jnp.sqrt(var + eps)
    t = beta + (bias - mean) * s
    return s[None, :], t[None, :]


def init_params(key, *, in_channels, num_channels, board, hidden1, hidden2, action_size):
    keys = iter(jax.random.split(key, 64))

    def dense(shape, fan_in):
        return (jax.random.normal(next(keys), shape, jnp.float32)
                / jnp.sqrt(jnp.float32(fan_in)))

    def bn(c):
        gamma = 0.5 + jax.random.uniform(next(keys), (c,), jnp.float32)
        beta = 0.1 * jax.random.normal(next(keys), (c,), jnp.float32)
        mean = 0.1 * jax.random.normal(next(keys), (c,), jnp.float32)
        var = 0.5 + jax.random.uniform(next(keys), (c,), jnp.float32)
        return gamma, beta, mean, var

    p = {}
    cins = [in_channels, num_channels, num_channels, num_channels]
    for i in range(4):
        cin = cins[i]
        p[f'w{i+1}'] = dense((9, cin, num_channels), 9 * cin)       # (K*K, Cin, Cout)
        b = 0.1 * jax.random.normal(next(keys), (num_channels,), jnp.float32)
        p[f's{i+1}'], p[f't{i+1}'] = _bn_fold(*bn(num_channels), b)

    flat = num_channels * (board - 2) * (board - 2)
    p['fc1_wt'] = dense((flat, hidden1), flat)                      # rows in NCHW order
    b1 = 0.1 * jax.random.normal(next(keys), (hidden1,), jnp.float32)
    p['fc1_s'], p['fc1_t'] = _bn_fold(*bn(hidden1), b1)

    p['fc2_wt'] = dense((hidden1, hidden2), hidden1)
    b2 = 0.1 * jax.random.normal(next(keys), (hidden2,), jnp.float32)
    p['fc2_s'], p['fc2_t'] = _bn_fold(*bn(hidden2), b2)

    p['pi_wt'] = dense((hidden2, action_size), hidden2)
    p['pi_b'] = (0.1 * jax.random.normal(next(keys), (action_size,), jnp.float32))[None, :]
    p['v_w'] = dense((1, hidden2), hidden2)
    p['v_b'] = (0.1 * jax.random.normal(next(keys), (1,), jnp.float32))[None, :]
    return p


# ---------------------------------------------------------------------------
# Pure-JAX reference (same math, no Pallas) for the correctness check
# ---------------------------------------------------------------------------
def reference_forward(x, p):
    def conv(x, w, s, t, pad):
        B, H, W, Cin = x.shape
        Cout = w.shape[-1]
        xp = jnp.pad(x, ((0, 0), (pad, pad), (pad, pad), (0, 0)))
        Ho, Wo = H + 2 * pad - 2, W + 2 * pad - 2
        acc = jnp.zeros((B, Ho, Wo, Cout), jnp.float32)
        for dh in range(3):
            for dw in range(3):
                slab = xp[:, dh:dh + Ho, dw:dw + Wo, :]
                acc = acc + jnp.einsum('bhwc,cd->bhwd', slab, w[dh * 3 + dw])
        return jnp.maximum(acc * s + t, 0.0)

    B = x.shape[0]
    h = x[..., None]
    h = conv(h, p['w1'], p['s1'], p['t1'], 1)
    h = conv(h, p['w2'], p['s2'], p['t2'], 1)
    h = conv(h, p['w3'], p['s3'], p['t3'], 1)
    h = conv(h, p['w4'], p['s4'], p['t4'], 0)
    flat = jnp.transpose(h, (0, 3, 1, 2)).reshape(B, -1)            # NCHW flatten
    h = jnp.maximum(flat @ p['fc1_wt'] * p['fc1_s'] + p['fc1_t'], 0.0)
    h = jnp.maximum(h @ p['fc2_wt'] * p['fc2_s'] + p['fc2_t'], 0.0)
    logits = h @ p['pi_wt'] + p['pi_b']
    pi = jax.nn.log_softmax(logits, axis=1)
    v = jnp.tanh(jnp.sum(h * p['v_w'], axis=-1, keepdims=True) + p['v_b'])
    return pi, v


# ---------------------------------------------------------------------------
if __name__ == "__main__":
    B, BOARD = 2, 8
    IN_CH, NUM_CH = 1, 16
    HIDDEN1, HIDDEN2 = 64, 32
    ACTION_SIZE = BOARD * BOARD + 1

    key = jax.random.PRNGKey(0)
    k_x, k_p = jax.random.split(key)
    x = jax.random.normal(k_x, (B, BOARD, BOARD), jnp.float32)
    params = init_params(k_p, in_channels=IN_CH, num_channels=NUM_CH, board=BOARD,
                         hidden1=HIDDEN1, hidden2=HIDDEN2, action_size=ACTION_SIZE)

    cfg = make_layout(BOARD, NUM_CH, HIDDEN1, HIDDEN2, ACTION_SIZE)
    w_slab, vec_slab = prepare_pallas_params(params, cfg)   # offline, not in hot path

    fwd = jax.jit(lambda xb, ws, vs: tictactoe_forward(xb, ws, vs, cfg))
    pi, v = fwd(x, w_slab, vec_slab)
    jax.block_until_ready((pi, v))

    pi_ref, v_ref = reference_forward(x, params)
    assert pi.shape == (B, ACTION_SIZE) and v.shape == (B, 1)
    # Tolerances account for bf16 MXU feeds (f32 accumulate + f32 epilogue);
    # the all-f32 variant of this kernel matched the reference to 2e-3.
    assert jnp.allclose(pi, pi_ref, atol=5e-2, rtol=2e-2)
    assert jnp.allclose(v, v_ref, atol=5e-2, rtol=2e-2)

    print("KERNEL_OK")
</pallas_src>

<mosaic_0001>
module attributes {stable_mosaic.version = 11 : i64} {
  func.func @kernel(%arg0: memref<20x10xf32, #tpu.memory_space<vmem>>, %arg1: memref<2144x256xbf16, #tpu.memory_space<vmem>>, %arg2: memref<16x256xf32, #tpu.memory_space<vmem>>, %arg3: memref<2x128xf32, #tpu.memory_space<vmem>>, %arg4: memref<2x1xf32, #tpu.memory_space<vmem>>, %arg5: memref<36x160xf32, #tpu.memory_space<vmem>>) attributes {dimension_semantics = [], scalar_prefetch = 0 : i64, scratch_operands = 1 : i64, tpu.core_type = #tpu.core_type<tc>} {
    %cst = arith.constant 0.000000e+00 : f32
    %0 = vector.broadcast %cst : f32 to vector<36x160xf32>
    %c0 = arith.constant 0 : index
    %c0_0 = arith.constant 0 : index
    %1 = vector.load %arg5[%c0, %c0_0] : memref<36x160xf32, #tpu.memory_space<vmem>>, vector<36x160xf32>
    tpu.vector_store %arg5[%c0, %c0_0], %0 {strides = array<i32>} : memref<36x160xf32, #tpu.memory_space<vmem>>, vector<36x160xf32>,
    %2 = tpu.iota {dimensions = array<i32: 0>} : vector<20x1xi32>
    %c10_i32 = arith.constant 10 : i32
    %c0_i32 = arith.constant 0 : i32
    %3 = arith.cmpi eq, %c10_i32, %c0_i32 : i32
    %c1_i32 = arith.constant 1 : i32
    %4 = arith.select %3, %c1_i32, %c10_i32 : i32
    %5 = vector.broadcast %4 : i32 to vector<20x1xi32>
    %6 = arith.remsi %2, %5 : vector<20x1xi32>
    %c0_i32_1 = arith.constant 0 : i32
    %7 = vector.broadcast %c0_i32_1 : i32 to vector<20x1xi32>
    %8 = arith.cmpi ne, %6, %7 : vector<20x1xi32>
    %c0_i32_2 = arith.constant 0 : i32
    %9 = vector.broadcast %c0_i32_2 : i32 to vector<20x1xi32>
    %10 = arith.cmpi slt, %6, %9 : vector<20x1xi32>
    %c0_i32_3 = arith.constant 0 : i32
    %11 = arith.cmpi slt, %4, %c0_i32_3 : i32
    %12 = vector.broadcast %11 : i1 to vector<20x1xi1>
    %13 = vector.broadcast %12 : vector<20x1xi1> to vector<20x1xi1>
    %14 = arith.xori %10, %13 : vector<20x1xi1>
    %15 = arith.andi %14, %8 : vector<20x1xi1>
    %16 = vector.broadcast %4 : i32 to vector<20x1xi32>
    %17 = arith.addi %6, %16 : vector<20x1xi32>
    %18 = arith.select %15, %17, %6 : vector<20x1xi1>, vector<20x1xi32>
    %c1_i32_4 = arith.constant 1 : i32
    %19 = vector.broadcast %c1_i32_4 : i32 to vector<20x1xi32>
    %20 = arith.cmpi sge, %18, %19 : vector<20x1xi32>
    %c8_i32 = arith.constant 8 : i32
    %21 = vector.broadcast %c8_i32 : i32 to vector<20x1xi32>
    %22 = arith.cmpi sle, %18, %21 : vector<20x1xi32>
    %23 = arith.andi %20, %22 : vector<20x1xi1>
    %24 = arith.extui %23 : vector<20x1xi1> to vector<20x1xi32>
    %25 = arith.sitofp %24 : vector<20x1xi32> to vector<20x1xf32>
    %c0_5 = arith.constant 0 : index
    %c0_6 = arith.constant 0 : index
    %26 = vector.load %arg0[%c0_5, %c0_6] : memref<20x10xf32, #tpu.memory_space<vmem>>, vector<20x10xf32>
    %c8 = arith.constant 8 : index
    %c0_7 = arith.constant 0 : index
    %27 = vector.load %arg5[%c8, %c0_7] : memref<36x160xf32, #tpu.memory_space<vmem>>, vector<20x10xf32>
    tpu.vector_store %arg5[%c8, %c0_7], %26 {strides = array<i32>} : memref<36x160xf32, #tpu.memory_space<vmem>>, vector<20x10xf32>,
    %c7 = arith.constant 7 : index
    %c0_8 = arith.constant 0 : index
    %28 = vector.load %arg5[%c7, %c0_8] : memref<36x160xf32, #tpu.memory_space<vmem>>, vector<20x10xf32>
    %c8_9 = arith.constant 8 : index
    %c0_10 = arith.constant 0 : index
    %29 = vector.load %arg5[%c8_9, %c0_10] : memref<36x160xf32, #tpu.memory_space<vmem>>, vector<20x10xf32>
    %c9 = arith.constant 9 : index
    %c0_11 = arith.constant 0 : index
    %30 = vector.load %arg5[%c9, %c0_11] : memref<36x160xf32, #tpu.memory_space<vmem>>, vector<20x10xf32>
    %31 = tpu.concatenate %28, %29, %30 in 1 : vector<20x10xf32>, vector<20x10xf32>, vector<20x10xf32> -> vector<20x30xf32>
    %32 = arith.truncf %31 : vector<20x30xf32> to vector<20x30xbf16>
    %c0_12 = arith.constant 0 : index
    %c0_13 = arith.constant 0 : index
    %33 = vector.load %arg1[%c0_12, %c0_13] : memref<2144x256xbf16, #tpu.memory_space<vmem>>, vector<30x160xbf16>
    %cst_14 = arith.constant dense<0.000000e+00> : vector<20x160xf32>
    %34 = tpu.matmul %32, %33, %cst_14 {dimension_numbers = #tpu.dot_dimension_numbers<[1], [0], [0], [1], [0, 0, 1, 1], [], []>} : vector<20x30xbf16>, vector<30x160xbf16>, vector<20x160xf32> -> vector<20x160xf32>
    %c0_15 = arith.constant 0 : index
    %c0_16 = arith.constant 0 : index
    %35 = vector.load %arg2[%c0_15, %c0_16] : memref<16x256xf32, #tpu.memory_space<vmem>>, vector<1x160xf32>
    %36 = vector.broadcast %35 : vector<1x160xf32> to vector<20x160xf32>
    %37 = arith.mulf %34, %36 : vector<20x160xf32>
    %c1 = arith.constant 1 : index
    %c0_17 = arith.constant 0 : index
    %38 = vector.load %arg2[%c1, %c0_17] : memref<16x256xf32, #tpu.memory_space<vmem>>, vector<1x160xf32>
    %39 = vector.broadcast %38 : vector<1x160xf32> to vector<20x160xf32>
    %40 = arith.addf %37, %39 : vector<20x160xf32>
    %cst_18 = arith.constant 0.000000e+00 : f32
    %41 = vector.broadcast %cst_18 : f32 to vector<20x160xf32>
    %42 = arith.maximumf %40, %41 : vector<20x160xf32>
    %43 = vector.broadcast %25 : vector<20x1xf32> to vector<20x160xf32>
    %44 = arith.mulf %42, %43 : vector<20x160xf32>
    %c8_19 = arith.constant 8 : index
    %c0_20 = arith.constant 0 : index
    %45 = vector.load %arg5[%c8_19, %c0_20] : memref<36x160xf32, #tpu.memory_space<vmem>>, vector<20x160xf32>
    tpu.vector_store %arg5[%c8_19, %c0_20], %44 {strides = array<i32>} : memref<36x160xf32, #tpu.memory_space<vmem>>, vector<20x160xf32>,
    %c7_21 = arith.constant 7 : index
    %c0_22 = arith.constant 0 : index
    %46 = vector.load %arg5[%c7_21, %c0_22] : memref<36x160xf32, #tpu.memory_space<vmem>>, vector<20x160xf32>
    %c8_23 = arith.constant 8 : index
    %c0_24 = arith.constant 0 : index
    %47 = vector.load %arg5[%c8_23, %c0_24] : memref<36x160xf32, #tpu.memory_space<vmem>>, vector<20x160xf32>
    %c9_25 = arith.constant 9 : index
    %c0_26 = arith.constant 0 : index
    %48 = vector.load %arg5[%c9_25, %c0_26] : memref<36x160xf32, #tpu.memory_space<vmem>>, vector<20x160xf32>
    %49 = tpu.concatenate %46, %47, %48 in 1 : vector<20x160xf32>, vector<20x160xf32>, vector<20x160xf32> -> vector<20x480xf32>
    %50 = arith.truncf %49 : vector<20x480xf32> to vector<20x480xbf16>
    %c32 = arith.constant 32 : index
    %c0_27 = arith.constant 0 : index
    %51 = vector.load %arg1[%c32, %c0_27] : memref<2144x256xbf16, #tpu.memory_space<vmem>>, vector<480x160xbf16>
    %cst_28 = arith.constant dense<0.000000e+00> : vector<20x160xf32>
    %52 = tpu.matmul %50, %51, %cst_28 {dimension_numbers = #tpu.dot_dimension_numbers<[1], [0], [0], [1], [0, 0, 1, 1], [], []>} : vector<20x480xbf16>, vector<480x160xbf16>, vector<20x160xf32> -> vector<20x160xf32>
    %c2 = arith.constant 2 : index
    %c0_29 = arith.constant 0 : index
    %53 = vector.load %arg2[%c2, %c0_29] : memref<16x256xf32, #tpu.memory_space<vmem>>, vector<1x160xf32>
    %54 = vector.broadcast %53 : vector<1x160xf32> to vector<20x160xf32>
    %55 = arith.mulf %52, %54 : vector<20x160xf32>
    %c3 = arith.constant 3 : index
    %c0_30 = arith.constant 0 : index
    %56 = vector.load %arg2[%c3, %c0_30] : memref<16x256xf32, #tpu.memory_space<vmem>>, vector<1x160xf32>
    %57 = vector.broadcast %56 : vector<1x160xf32> to vector<20x160xf32>
    %58 = arith.addf %55, %57 : vector<20x160xf32>
    %cst_31 = arith.constant 0.000000e+00 : f32
    %59 = vector.broadcast %cst_31 : f32 to vector<20x160xf32>
    %60 = arith.maximumf %58, %59 : vector<20x160xf32>
    %61 = vector.broadcast %25 : vector<20x1xf32> to vector<20x160xf32>
    %62 = arith.mulf %60, %61 : vector<20x160xf32>
    %c8_32 = arith.constant 8 : index
    %c0_33 = arith.constant 0 : index
    %63 = vector.load %arg5[%c8_32, %c0_33] : memref<36x160xf32, #tpu.memory_space<vmem>>, vector<20x160xf32>
    tpu.vector_store %arg5[%c8_32, %c0_33], %62 {strides = array<i32>} : memref<36x160xf32, #tpu.memory_space<vmem>>, vector<20x160xf32>,
    %c7_34 = arith.constant 7 : index
    %c0_35 = arith.constant 0 : index
    %64 = vector.load %arg5[%c7_34, %c0_35] : memref<36x160xf32, #tpu.memory_space<vmem>>, vector<20x160xf32>
    %c8_36 = arith.constant 8 : index
    %c0_37 = arith.constant 0 : index
    %65 = vector.load %arg5[%c8_36, %c0_37] : memref<36x160xf32, #tpu.memory_space<vmem>>, vector<20x160xf32>
    %c9_38 = arith.constant 9 : index
    %c0_39 = arith.constant 0 : index
    %66 = vector.load %arg5[%c9_38, %c0_39] : memref<36x160xf32, #tpu.memory_space<vmem>>, vector<20x160xf32>
    %67 = tpu.concatenate %64, %65, %66 in 1 : vector<20x160xf32>, vector<20x160xf32>, vector<20x160xf32> -> vector<20x480xf32>
    %68 = arith.truncf %67 : vector<20x480xf32> to vector<20x480xbf16>
    %c512 = arith.constant 512 : index
    %c0_40 = arith.constant 0 : index
    %69 = vector.load %arg1[%c512, %c0_40] : memref<2144x256xbf16, #tpu.memory_space<vmem>>, vector<480x160xbf16>
    %cst_41 = arith.constant dense<0.000000e+00> : vector<20x160xf32>
    %70 = tpu.matmul %68, %69, %cst_41 {dimension_numbers = #tpu.dot_dimension_numbers<[1], [0], [0], [1], [0, 0, 1, 1], [], []>} : vector<20x480xbf16>, vector<480x160xbf16>, vector<20x160xf32> -> vector<20x160xf32>
    %c4 = arith.constant 4 : index
    %c0_42 = arith.constant 0 : index
    %71 = vector.load %arg2[%c4, %c0_42] : memref<16x256xf32, #tpu.memory_space<vmem>>, vector<1x160xf32>
    %72 = vector.broadcast %71 : vector<1x160xf32> to vector<20x160xf32>
    %73 = arith.mulf %70, %72 : vector<20x160xf32>
    %c5 = arith.constant 5 : index
    %c0_43 = arith.constant 0 : index
    %74 = vector.load %arg2[%c5, %c0_43] : memref<16x256xf32, #tpu.memory_space<vmem>>, vector<1x160xf32>
    %75 = vector.broadcast %74 : vector<1x160xf32> to vector<20x160xf32>
    %76 = arith.addf %73, %75 : vector<20x160xf32>
    %cst_44 = arith.constant 0.000000e+00 : f32
    %77 = vector.broadcast %cst_44 : f32 to vector<20x160xf32>
    %78 = arith.maximumf %76, %77 : vector<20x160xf32>
    %79 = vector.broadcast %25 : vector<20x1xf32> to vector<20x160xf32>
    %80 = arith.mulf %78, %79 : vector<20x160xf32>
    %c8_45 = arith.constant 8 : index
    %c0_46 = arith.constant 0 : index
    %81 = vector.load %arg5[%c8_45, %c0_46] : memref<36x160xf32, #tpu.memory_space<vmem>>, vector<20x160xf32>
    tpu.vector_store %arg5[%c8_45, %c0_46], %80 {strides = array<i32>} : memref<36x160xf32, #tpu.memory_space<vmem>>, vector<20x160xf32>,
    %c8_47 = arith.constant 8 : index
    %c0_48 = arith.constant 0 : index
    %82 = vector.load %arg5[%c8_47, %c0_48] : memref<36x160xf32, #tpu.memory_space<vmem>>, vector<20x160xf32>
    %c9_49 = arith.constant 9 : index
    %c0_50 = arith.constant 0 : index
    %83 = vector.load %arg5[%c9_49, %c0_50] : memref<36x160xf32, #tpu.memory_space<vmem>>, vector<20x160xf32>
    %c10 = arith.constant 10 : index
    %c0_51 = arith.constant 0 : index
    %84 = vector.load %arg5[%c10, %c0_51] : memref<36x160xf32, #tpu.memory_space<vmem>>, vector<20x160xf32>
    %85 = tpu.concatenate %82, %83, %84 in 1 : vector<20x160xf32>, vector<20x160xf32>, vector<20x160xf32> -> vector<20x480xf32>
    %86 = arith.truncf %85 : vector<20x480xf32> to vector<20x480xbf16>
    %c992 = arith.constant 992 : index
    %c0_52 = arith.constant 0 : index
    %87 = vector.load %arg1[%c992, %c0_52] : memref<2144x256xbf16, #tpu.memory_space<vmem>>, vector<480x96xbf16>
    %cst_53 = arith.constant dense<0.000000e+00> : vector<20x96xf32>
    %88 = tpu.matmul %86, %87, %cst_53 {dimension_numbers = #tpu.dot_dimension_numbers<[1], [0], [0], [1], [0, 0, 1, 1], [], []>} : vector<20x480xbf16>, vector<480x96xbf16>, vector<20x96xf32> -> vector<20x96xf32>
    %c6 = arith.constant 6 : index
    %c0_54 = arith.constant 0 : index
    %89 = vector.load %arg2[%c6, %c0_54] : memref<16x256xf32, #tpu.memory_space<vmem>>, vector<1x96xf32>
    %90 = vector.broadcast %89 : vector<1x96xf32> to vector<20x96xf32>
    %91 = arith.mulf %88, %90 : vector<20x96xf32>
    %c7_55 = arith.constant 7 : index
    %c0_56 = arith.constant 0 : index
    %92 = vector.load %arg2[%c7_55, %c0_56] : memref<16x256xf32, #tpu.memory_space<vmem>>, vector<1x96xf32>
    %93 = vector.broadcast %92 : vector<1x96xf32> to vector<20x96xf32>
    %94 = arith.addf %91, %93 : vector<20x96xf32>
    %cst_57 = arith.constant 0.000000e+00 : f32
    %95 = vector.broadcast %cst_57 : f32 to vector<20x96xf32>
    %96 = arith.maximumf %94, %95 : vector<20x96xf32>
    %c8_58 = arith.constant 8 : index
    %c0_59 = arith.constant 0 : index
    %97 = vector.load %arg5[%c8_58, %c0_59] : memref<36x160xf32, #tpu.memory_space<vmem>>, vector<20x96xf32>
    tpu.vector_store %arg5[%c8_58, %c0_59], %96 {strides = array<i32>} : memref<36x160xf32, #tpu.memory_space<vmem>>, vector<20x96xf32>,
    %c8_60 = arith.constant 8 : index
    %c0_61 = arith.constant 0 : index
    %98 = vector.load %arg5[%c8_60, %c0_61] : memref<36x160xf32, #tpu.memory_space<vmem>>, vector<20x96xf32>
    %c9_62 = arith.constant 9 : index
    %c0_63 = arith.constant 0 : index
    %99 = vector.load %arg5[%c9_62, %c0_63] : memref<36x160xf32, #tpu.memory_space<vmem>>, vector<20x96xf32>
    %c10_64 = arith.constant 10 : index
    %c0_65 = arith.constant 0 : index
    %100 = vector.load %arg5[%c10_64, %c0_65] : memref<36x160xf32, #tpu.memory_space<vmem>>, vector<20x96xf32>
    %c11 = arith.constant 11 : index
    %c0_66 = arith.constant 0 : index
    %101 = vector.load %arg5[%c11, %c0_66] : memref<36x160xf32, #tpu.memory_space<vmem>>, vector<20x96xf32>
    %c12 = arith.constant 12 : index
    %c0_67 = arith.constant 0 : index
    %102 = vector.load %arg5[%c12, %c0_67] : memref<36x160xf32, #tpu.memory_space<vmem>>, vector<20x96xf32>
    %c13 = arith.constant 13 : index
    %c0_68 = arith.constant 0 : index
    %103 = vector.load %arg5[%c13, %c0_68] : memref<36x160xf32, #tpu.memory_space<vmem>>, vector<20x96xf32>
    %104 = tpu.concatenate %98, %99, %100, %101, %102, %103 in 1 : vector<20x96xf32>, vector<20x96xf32>, vector<20x96xf32>, vector<20x96xf32>, vector<20x96xf32>, vector<20x96xf32> -> vector<20x576xf32>
    %105 = arith.truncf %104 : vector<20x576xf32> to vector<20x576xbf16>
    %c1472 = arith.constant 1472 : index
    %c0_69 = arith.constant 0 : index
    %106 = vector.load %arg1[%c1472, %c0_69] : memref<2144x256xbf16, #tpu.memory_space<vmem>>, vector<576x64xbf16>
    %cst_70 = arith.constant dense<0.000000e+00> : vector<20x64xf32>
    %107 = tpu.matmul %105, %106, %cst_70 {dimension_numbers = #tpu.dot_dimension_numbers<[1], [0], [0], [1], [0, 0, 1, 1], [], []>} : vector<20x576xbf16>, vector<576x64xbf16>, vector<20x64xf32> -> vector<20x64xf32>
    %c8_71 = arith.constant 8 : index
    %c0_72 = arith.constant 0 : index
    %108 = vector.load %arg2[%c8_71, %c0_72] : memref<16x256xf32, #tpu.memory_space<vmem>>, vector<1x64xf32>
    %109 = vector.broadcast %108 : vector<1x64xf32> to vector<20x64xf32>
    %110 = arith.mulf %107, %109 : vector<20x64xf32>
    %c9_73 = arith.constant 9 : index
    %c0_74 = arith.constant 0 : index
    %111 = vector.load %arg2[%c9_73, %c0_74] : memref<16x256xf32, #tpu.memory_space<vmem>>, vector<1x64xf32>
    %112 = vector.broadcast %111 : vector<1x64xf32> to vector<20x64xf32>
    %113 = arith.addf %110, %112 : vector<20x64xf32>
    %cst_75 = arith.constant 0.000000e+00 : f32
    %114 = vector.broadcast %cst_75 : f32 to vector<20x64xf32>
    %115 = arith.maximumf %113, %114 : vector<20x64xf32>
    %116 = vector.extract_strided_slice %115 {offsets = [1, 0], sizes = [1, 64], strides = [1, 1]} : vector<20x64xf32> to vector<1x64xf32>
    %117 = vector.extract_strided_slice %115 {offsets = [11, 0], sizes = [1, 64], strides = [1, 1]} : vector<20x64xf32> to vector<1x64xf32>
    %118 = tpu.concatenate %116, %117 in 0 : vector<1x64xf32>, vector<1x64xf32> -> vector<2x64xf32>
    %119 = arith.truncf %118 : vector<2x64xf32> to vector<2x64xbf16>
    %c2048 = arith.constant 2048 : index
    %c0_76 = arith.constant 0 : index
    %120 = vector.load %arg1[%c2048, %c0_76] : memref<2144x256xbf16, #tpu.memory_space<vmem>>, vector<64x32xbf16>
    %cst_77 = arith.constant dense<0.000000e+00> : vector<2x32xf32>
    %121 = tpu.matmul %119, %120, %cst_77 {dimension_numbers = #tpu.dot_dimension_numbers<[1], [0], [0], [1], [0, 0, 1, 1], [], []>} : vector<2x64xbf16>, vector<64x32xbf16>, vector<2x32xf32> -> vector<2x32xf32>
    %c10_78 = arith.constant 10 : index
    %c0_79 = arith.constant 0 : index
    %122 = vector.load %arg2[%c10_78, %c0_79] : memref<16x256xf32, #tpu.memory_space<vmem>>, vector<1x32xf32>
    %123 = vector.broadcast %122 : vector<1x32xf32> to vector<2x32xf32>
    %124 = arith.mulf %121, %123 : vector<2x32xf32>
    %c11_80 = arith.constant 11 : index
    %c0_81 = arith.constant 0 : index
    %125 = vector.load %arg2[%c11_80, %c0_81] : memref<16x256xf32, #tpu.memory_space<vmem>>, vector<1x32xf32>
    %126 = vector.broadcast %125 : vector<1x32xf32> to vector<2x32xf32>
    %127 = arith.addf %124, %126 : vector<2x32xf32>
    %cst_82 = arith.constant 0.000000e+00 : f32
    %128 = vector.broadcast %cst_82 : f32 to vector<2x32xf32>
    %129 = arith.maximumf %127, %128 : vector<2x32xf32>
    %130 = arith.truncf %129 : vector<2x32xf32> to vector<2x32xbf16>
    %c2112 = arith.constant 2112 : index
    %c0_83 = arith.constant 0 : index
    %131 = vector.load %arg1[%c2112, %c0_83] : memref<2144x256xbf16, #tpu.memory_space<vmem>>, vector<32x256xbf16>
    %cst_84 = arith.constant dense<0.000000e+00> : vector<2x256xf32>
    %132 = tpu.matmul %130, %131, %cst_84 {dimension_numbers = #tpu.dot_dimension_numbers<[1], [0], [0], [1], [0, 0, 1, 1], [], []>} : vector<2x32xbf16>, vector<32x256xbf16>, vector<2x256xf32> -> vector<2x256xf32>
    %c12_85 = arith.constant 12 : index
    %c0_86 = arith.constant 0 : index
    %133 = vector.load %arg2[%c12_85, %c0_86] : memref<16x256xf32, #tpu.memory_space<vmem>>, vector<1x256xf32>
    %134 = vector.broadcast %133 : vector<1x256xf32> to vector<2x256xf32>
    %135 = arith.addf %132, %134 : vector<2x256xf32>
    %136 = vector.extract_strided_slice %135 {offsets = [0, 0], sizes = [2, 128], strides = [1, 1]} : vector<2x256xf32> to vector<2x128xf32>
    %cst_87 = arith.constant dense<0xFF800000> : vector<2xf32>
    %137 = vector.multi_reduction <maximumf>, %136, %cst_87 [1] : vector<2x128xf32> to vector<2xf32>
    %138 = vector.shape_cast %137 : vector<2xf32> to vector<2x1xf32>
    %139 = vector.broadcast %138 : vector<2x1xf32> to vector<2x128xf32>
    %140 = arith.subf %136, %139 : vector<2x128xf32>
    %141 = math.exp %140 : vector<2x128xf32>
    %cst_88 = arith.constant dense<0.000000e+00> : vector<2xf32>
    %142 = vector.multi_reduction <add>, %141, %cst_88 [1] : vector<2x128xf32> to vector<2xf32>
    %143 = vector.shape_cast %142 : vector<2xf32> to vector<2x1xf32>
    %144 = math.log %143 : vector<2x1xf32>
    %145 = vector.broadcast %144 : vector<2x1xf32> to vector<2x128xf32>
    %146 = arith.subf %140, %145 : vector<2x128xf32>
    %c0_89 = arith.constant 0 : index
    %c0_90 = arith.constant 0 : index
    %147 = vector.load %arg3[%c0_89, %c0_90] : memref<2x128xf32, #tpu.memory_space<vmem>>, vector<2x128xf32>
    tpu.vector_store %arg3[%c0_89, %c0_90], %146 {strides = array<i32>} : memref<2x128xf32, #tpu.memory_space<vmem>>, vector<2x128xf32>,
    %148 = vector.extract_strided_slice %135 {offsets = [0, 128], sizes = [2, 1], strides = [1, 1]} : vector<2x256xf32> to vector<2x1xf32>
    %149 = math.tanh %148 : vector<2x1xf32>
    %c0_91 = arith.constant 0 : index
    %c0_92 = arith.constant 0 : index
    %150 = vector.load %arg4[%c0_91, %c0_92] : memref<2x1xf32, #tpu.memory_space<vmem>>, vector<2x1xf32>
    tpu.vector_store %arg4[%c0_91, %c0_92], %149 {strides = array<i32>} : memref<2x1xf32, #tpu.memory_space<vmem>>, vector<2x1xf32>,
    return
  }
}

</mosaic_0001>

<bundles_post_ra>
// kernel: _lambda_.1
= control target key start
LH: loop header
LB: loop body
LE: loop exit
PB: predicated region body
PF: predicated region fallthrough
CT: control target
= control target key end

     0   :  { %10 = vsyncpa [#allocation4], 0  ;;  %s4402_s0 = inlined_call_operand.vmem [shape: f32[20,10], index: 0, kind: input, shape index: {}]   ;;  %s4403_s1 = inlined_call_operand.hbm [shape: bf16[2144,256], index: 1, kind: input, shape index: {}]   ;;  %s4404_s2 = inlined_call_operand.hbm [shape: f32[16,256], index: 2, kind: input, shape index: {}]   ;;  %s4405_s3 = inlined_call_operand.hbm [shape: f32[2,128], index: 3, kind: output, shape index: {0}]   ;;  %s4406_s4 = inlined_call_operand.vmem [shape: f32[2,1], index: 4, kind: output, shape index: {1}]  }
   0x1   :  { %11 = vsyncpa [#allocation7], 0 }
   0x2   :  { %12 = vsyncpa [#allocation5], 0  ;;  %s3865_s15 = smov [#allocation3]   ;;  %s3793_s19 = scalar_lea.hbm %s4403_s1, 34304 }
   0x3   :  { %s20_s16 = sshll.u32 %s3865_s15, 4  ;;  %p3794_p0 = scmp.ne.s32.totalorder %s4403_s1, %s3793_s19  ;;  %s21_s16 = int_to_ptr.vmem [resolvable:$true] %s20_s16 }
   0x4   :  { %p3797_p1 = scmp.lt.u32.totalorder %s3793_s19, %s4403_s1 }
   0x6   :  { %p3799_p2 = pnand %p3797_p1, %p3794_p0 }
   0x8   :  { %3802 = shalt.err (!%p3799_p2)
}
   0x9   :  { %s3803_s24 = scalar_lea.vmem %s21_s16, 34304  ;;  %p3808_p4 = scmp.lt.s32.totalorder %s21_s16, %s21_s16 }
   0xa   :  { %p3804_p3 = scmp.ne.s32.totalorder %s21_s16, %s3803_s24  ;;  %p3809_p5 = scmp.lt.s32.totalorder %s3803_s24, %s3803_s24 }
   0xc   :  { %p3810_p6 = por %p3809_p5, %p3808_p4 }
   0xe   :  { %p3811_p7 = pnand %p3810_p6, %p3804_p3 }
  0x10   :  { %3814 = shalt.err (!%p3811_p7)
}
  0x11   :  { %s3866_s25 = smov 128   ;;  %s3867_s26 = smov 8  }
  0x12   :  { %26 = dma.hbm_to_vmem [thread:$0]  %s4403_s1, 34304, %s21_s16, [#allocation4], %s3866_s25, %s3866_s25, %s3867_s26  }
  0x13   :  { %s3868_s29 = smov [#allocation6]   ;;  %s3815_s7 = scalar_lea.hbm %s4404_s2, 512 }
  0x14   :  { %s32_s30 = sshll.u32 %s3868_s29, 4  ;;  %p3816_p8 = scmp.ne.s32.totalorder %s4404_s2, %s3815_s7  ;;  %s33_s30 = int_to_ptr.vmem [resolvable:$true] %s32_s30 }
  0x15   :  { %p3819_p9 = scmp.lt.u32.totalorder %s3815_s7, %s4404_s2 }
  0x17   :  { %p3821_p10 = pnand %p3819_p9, %p3816_p8 }
  0x19   :  { %3824 = shalt.err (!%p3821_p10)
}
  0x1a   :  { %s3825_s12 = scalar_lea.vmem %s33_s30, 512  ;;  %p3830_p12 = scmp.lt.s32.totalorder %s33_s30, %s33_s30 }
  0x1b   :  { %p3826_p11 = scmp.ne.s32.totalorder %s33_s30, %s3825_s12  ;;  %p3831_p13 = scmp.lt.s32.totalorder %s3825_s12, %s3825_s12 }
  0x1d   :  { %p3832_p0 = por %p3831_p13, %p3830_p12 }
  0x1f   :  { %p3833_p1 = pnand %p3832_p0, %p3826_p11 }
  0x21   :  { %3836 = shalt.err (!%p3833_p1)
}
  0x22   :  { %s3869_s1 = smov 256   ;;  %s3870_s13 = smov 16  }
  0x23   :  { %38 = dma.hbm_to_vmem [thread:$0]  %s4404_s2, 512, %s33_s30, [#allocation7], %s3869_s1, %s3869_s1, %s3870_s13  }
  0x24   :  { %3859 = dma.done.wait [#allocation4], 34304  }
  0x25   :  { %3860 = vsyncadd [#allocation4], 4294932992 }
  0x26   :  { %3861 = dma.done.wait [#allocation7], 512  }
  0x27   :  { %3862 = vsyncadd [#allocation7], 4294966784  ;;  %v3871_v0 = vmov 0.0   ;;  %vm128_vm0 = vcmask 80896   ;;  %vm131_vm1 = vcmask 76800   ;;  %v125_v1 = vld [vmem:[%s4402_s0] sm:$0xff] }
  0x28   :  { %49 = vst [vmem:[#allocation2 + $0x10] sm:$0xff] %v3871_v0  ;;  %51 = vst [vmem:[#allocation2 + $0x20] sm:$0xff] %v3871_v0  ;;  %v126_v2 = vld [vmem:[%s4402_s0 + $0x8] sm:$0xff]  ;;  %v127_v3 = vld [vmem:[%s4402_s0 + $0x10] sm:$0xf]  ;;  %vm143_vm2 = vcmask 1046528  }
  0x29   :  { %46 = vst [vmem:[#allocation2] sm:$0xff] %v3871_v0  ;;  %53 = vst [vmem:[#allocation2 + $0x30] sm:$0xff] %v3871_v0  ;;  %vm163_vm3 = vcmask 1045504   ;;  %v3524_v17 = vld [vmem:[#allocation3 + $0x4] ss:$8 sps:$4 sm:$0xff]   ;;  %s3872_s0 = smov 10  }
  0x2a   :  { %55 = vst [vmem:[#allocation2 + $0x40] sm:$0xf] %v3871_v0  ;;  %129 = vst.msk [vmem:[#allocation2 + $0x10] sm:$0xff] %vm128_vm0, %v125_v1  ;;  %v3526_v18 = vld [vmem:[#allocation3] ss:$8 sps:$4 sm:$0xff]   ;;  %245 = vmatprep.subr.bf16.mxu0 %v3524_v17  ;;  %s3873_s21 = smov 20  }
  0x2b   :  { %130 = vst.msk [vmem:[#allocation2 + $0x20] sm:$0xff] %vm128_vm0, %v126_v2  ;;  %v3527_v22 = vld [vmem:[#allocation3 + $0x14] ss:$8 sps:$4 sm:$0x7f]   ;;  %246 = vmatpush1.bf16.msra.mxu0 %v3526_v18  ;;  %v3874_v27 = vmov 0   ;;  %vm185_vm4 = vcmask 162816  }
  0x2c   :  { %132 = vst.msk [vmem:[#allocation2 + $0x30] sm:$0xf] %vm131_vm1, %v127_v3  ;;  %v3529_v23 = vld [vmem:[#allocation3 + $0x10] ss:$8 sps:$4 sm:$0x7f]   ;;  %277 = vmatprep.mubr.bf16.mxu0 %v3874_v27  ;;  %3011 = vmatprep.subr.msk.bf16.mxu0 %vm143_vm2, %v3527_v22  ;;  %vm232_vm6 = vcmask 244736  }
  0x2d   :  { %v240_v28 = vsel %vm143_vm2, %v3529_v23, 0  ;;  %vm196_vm5 = vsmask.f32 4352  ;;  %vm47_vm7 = vcmask 261120   ;;  %vm56_vm8 = vcmask 257024   ;;  %s3875_s22 = smov 32  }
  0x2e   :  { %50 = vst.msk [vmem:[#allocation2 + $0x18] sm:$0xff] %vm47_vm7, %v3871_v0  ;;  %48 = vst.msk [vmem:[#allocation2 + $0x8] sm:$0xff] %vm47_vm7, %v3871_v0  ;;  %v3530_v1 = vld [vmem:[#allocation3 + $0x24] ss:$8 sps:$4 sm:$0xff]   ;;  %v3532_v2 = vld [vmem:[#allocation3 + $0x20] ss:$8 sps:$4 sm:$0xff]  }
  0x2f   :  { %248 = vmatpush1.bf16.msra.mxu0 %v240_v28  ;;  %52 = vst.msk [vmem:[#allocation2 + $0x28] sm:$0xff] %vm47_vm7, %v3871_v0  ;;  %54 = vst.msk [vmem:[#allocation2 + $0x38] sm:$0xff] %vm47_vm7, %v3871_v0  ;;  %v3533_v3 = vld [vmem:[#allocation3 + $0x34] ss:$8 sps:$4 sm:$0xff]   ;;  %909 = vmatprep.subr.bf16.mxu1 %v3530_v1  ;;  %v3554_v17 = vld [vmem:[#allocation3 + $0xa4] ss:$8 sps:$4 sm:$0xff]  }
  0x30   :  { %v133_v30 = vld [vmem:[#allocation2] sm:$0x80]  ;;  %910 = vmatpush1.bf16.msra.mxu1 %v3532_v2  ;;  %v3556_v18 = vld [vmem:[#allocation3 + $0xa0] ss:$8 sps:$4 sm:$0xff]   ;;  %s3876_s23 = smov 64   ;;  %s3877_s24 = smov 96  }
  0x31   :  { %v134_v4 = vld [vmem:[#allocation2 + $0x10] sm:$0xff]  ;;  %911 = vmatprep.subr.bf16.mxu1 %v3533_v3  ;;  %v3563_v23 = vld [vmem:[#allocation3 + $0xd4] ss:$8 sps:$4 sm:$0xff]   ;;  %s3879_s27 = smov [#allocation8]  }
  0x32   :  { %v135_v5 = vld [vmem:[#allocation2 + $0x20] sm:$0xff]  ;;  %v138_v6 = vld [vmem:[#allocation2 + $0x10] sm:$0xfe]  ;;  %v144_v7 = vrot.slane %v134_v4, 1  ;;  %s2990_s28 = sshll.u32 %s3879_s27, 4  ;;  %s2991_s28 = int_to_ptr.vmem [resolvable:$true] %s2990_s28 }
  0x33   :  { %v145_v8 = vrot.slane %v135_v5, 1  ;;  %v164_v9 = vrot.slane %v138_v6, 2  ;;  %v165_v10 = vrot.slane %v135_v5, 2  ;;  %v137_v11 = vld [vmem:[#allocation2 + $0x30] sm:$0xf]  ;;  %s3837_s29 = scalar_lea.vmem %s2991_s28, 32  ;;  %p3842_p3 = scmp.lt.s32.totalorder %s2991_s28, %s2991_s28 }
  0x34   :  { %v147_v12 = vrot.slane %v137_v11, 1  ;;  %v139_v13 = vld [vmem:[#allocation2 + $0x30] sm:$0x1f]  ;;  %v3545_v11 = vld [vmem:[#allocation3 + $0x74] ss:$8 sps:$4 sm:$0xff]   ;;  %p3838_p2 = scmp.ne.s32.totalorder %s2991_s28, %s3837_s29  ;;  %p3843_p4 = scmp.lt.s32.totalorder %s3837_s29, %s3837_s29 }
  0x35   :  { %v146_v14 = vsel %vm143_vm2, %v144_v7, %v145_v8  ;;  %v166_v15 = vsel %vm163_vm3, %v164_v9, %v165_v10  ;;  %v167_v16 = vrot.slane %v139_v13, 2  ;;  %v136_v40 = vld [vmem:[#allocation2 + $0x30] sm:$0x7]  ;;  %v3548_v13 = vld [vmem:[#allocation3 + $0x84] ss:$8 sps:$4 sm:$0xff]  }
  0x36   :  { %v3374_v19 = vpack.i.bf16 %v146_v14, %v144_v7  ;;  %v3384_v20 = vpack.i.bf16 %v166_v15, %v164_v9  ;;  %v148_v21 = vsel %vm143_vm2, %v145_v8, %v147_v12  ;;  %v3538_v6 = vld [vmem:[#allocation3 + $0x40] ss:$8 sps:$4 sm:$0xff]   ;;  %v3539_v7 = vld [vmem:[#allocation3 + $0x54] ss:$8 sps:$4 sm:$0xff]   ;;  %v3541_v8 = vld [vmem:[#allocation3 + $0x50] ss:$8 sps:$4 sm:$0xff]   ;;  %p3844_p5 = por %p3843_p4, %p3842_p3 }
  0x37   :  { %v168_v24 = vsel %vm163_vm3, %v165_v10, %v167_v16  ;;  %v3379_v25 = vpack.i.bf16 %v147_v12, %v148_v21  ;;  %v3542_v9 = vld [vmem:[#allocation3 + $0x64] ss:$8 sps:$4 sm:$0xff]   ;;  %v3544_v10 = vld [vmem:[#allocation3 + $0x60] ss:$8 sps:$4 sm:$0xff]   ;;  %v3547_v12 = vld [vmem:[#allocation3 + $0x70] ss:$8 sps:$4 sm:$0xff]  }
  0x38   :  { %3375 = vrot.lane.b32.xlu0 %v3374_v19, %s3872_s0  ;;  %3385 = vrot.lane.b32.xlu1 %v3384_v20, %s3873_s21  ;;  %v3389_v26 = vpack.i.bf16 %v167_v16, %v168_v24  ;;  %v3550_v14 = vld [vmem:[#allocation3 + $0x80] ss:$8 sps:$4 sm:$0xff]   ;;  %v3551_v15 = vld [vmem:[#allocation3 + $0x94] ss:$8 sps:$4 sm:$0xff]   ;;  %v3553_v16 = vld [vmem:[#allocation3 + $0x90] ss:$8 sps:$4 sm:$0xff]   ;;  %p3845_p6 = pnand %p3844_p5, %p3838_p2 }
  0x39   :  { %v3557_v19 = vld [vmem:[#allocation3 + $0xb4] ss:$8 sps:$4 sm:$0xff]   ;;  %v3559_v20 = vld [vmem:[#allocation3 + $0xb0] ss:$8 sps:$4 sm:$0xff]   ;;  %v3560_v21 = vld [vmem:[#allocation3 + $0xc4] ss:$8 sps:$4 sm:$0xff]  }
  0x3a   :  { %v3562_v22 = vld [vmem:[#allocation3 + $0xc0] ss:$8 sps:$4 sm:$0xff]   ;;  %v3565_v24 = vld [vmem:[#allocation3 + $0xd0] ss:$8 sps:$4 sm:$0xff]  }
  0x3c   :  { %3380 = vrot.lane.b32.xlu0 %v3379_v25, %s3872_s0  ;;  %3390 = vrot.lane.b32.xlu1 %v3389_v26, %s3873_s21  ;;  %v58_v25 = vlaneseq }
  0x3e   :  { %v59_v26 = vshrl.u32 %v58_v25, 7 }
  0x40   :  { %v60_v28 = vadd.s32 8, %v59_v26 }
  0xaa   :  { %v3376_v29 = vpop.permute.xlu0 %3375  ;;  %v3386_v31 = vpop.permute.xlu1 %3385 }
  0xab   :  { %v3378_v32 = vunpack.i.h.bf16 %v3376_v29  ;;  %v3377_v33 = vunpack.i.l.bf16 %v3376_v29  ;;  %v3388_v34 = vunpack.i.h.bf16 %v3386_v31  ;;  %v3387_v35 = vunpack.i.l.bf16 %v3386_v31 }
  0xad   :  { %v182_v36 = vsel %vm128_vm0, %v134_v4, %v3378_v32  ;;  %v181_v37 = vsel %vm128_vm0, %v133_v30, %v3377_v33  ;;  %v3535_v4 = vld [vmem:[#allocation3 + $0x30] ss:$8 sps:$4 sm:$0xff]   ;;  %v3970_v29 = vmul.u32.u64.low 3435973837, %v59_v26  ;;  %v3971_v30 = vmul.u32.u64.high 3435973837, %v59_v26, %v3970_v29 }
  0xae   :  { %v186_v38 = vsel %vm185_vm4, %v181_v37, %v3387_v35  ;;  %v187_v39 = vsel %vm185_vm4, %v182_v36, %v3388_v34  ;;  %v3381_v41 = vpop.permute.xlu0 %3380  ;;  %v3391_v42 = vpop.permute.xlu1 %3390  ;;  %912 = vmatpush1.bf16.msra.mxu1 %v3535_v4  ;;  %v3973_v31 = vmul.u32.u64.low 3435973837, %v60_v28  ;;  %v3974_v32 = vmul.u32.u64.high 3435973837, %v60_v28, %v3973_v31 }
  0xaf   :  { %v190_v43 = vpack.c.bf16 %v187_v39, %v186_v38  ;;  %v3383_v44 = vunpack.i.h.bf16 %v3381_v41  ;;  %v3382_v45 = vunpack.i.l.bf16 %v3381_v41  ;;  %v3393_v46 = vunpack.i.h.bf16 %v3391_v42 }
  0xb0   :  { %v3392_v47 = vunpack.i.l.bf16 %v3391_v42  ;;  %v61_v33 = vadd.s32 16, %v59_v26  ;;  %v68_v36 = vshrl.u32 %v3971_v30, 3  ;;  %v79_v37 = vshrl.u32 %v3974_v32, 3 }
  0xb1   :  { %v198_v48 = vshrl.u32 %v190_v43, 16  ;;  %v201_v49 = vshll.u32 %v190_v43, 16  ;;  %v184_v50 = vsel %vm128_vm0, %v136_v40, %v3383_v44  ;;  %v183_v51 = vsel %vm128_vm0, %v135_v5, %v3382_v45  ;;  %v3536_v5 = vld [vmem:[#allocation3 + $0x44] ss:$8 sps:$4 sm:$0xff]  }
  0xb2   :  { %v188_v52 = vsel %vm185_vm4, %v183_v51, %v3392_v47  ;;  %v189_v53 = vsel %vm185_vm4, %v184_v50, %v3393_v46  ;;  %913 = vmatprep.subr.bf16.mxu1 %v3536_v5  ;;  %v3976_v34 = vmul.u32.u64.low 3435973837, %v61_v33  ;;  %v3977_v35 = vmul.u32.u64.high 3435973837, %v61_v33, %v3976_v34  ;;  %v315_v51 = vld [vmem:[#allocation6 + $0x1] ss:$8 sm:$0x3] }
  0xb3   :  { %v191_v54 = vpack.c.bf16 %v189_v53, %v188_v52  ;;  %v200_v55 = vrot.slane %v198_v48, 3  ;;  %v203_v56 = vrot.slane %v201_v49, 4  ;;  %914 = vmatpush1.bf16.msra.mxu1 %v3538_v6  ;;  %v69_v38 = vmul.u32 10, %v68_v36  ;;  %v296_v48 = vld [vmem:[#allocation6] ss:$8 sm:$0x3] }
  0xb4   :  { %915 = vmatprep.subr.bf16.mxu1 %v3539_v7  ;;  %v80_v39 = vmul.u32 10, %v79_v37  ;;  %v90_v40 = vshrl.u32 %v3977_v35, 3  ;;  %v3982_v47 = vsub.s32 0, %v59_v26  ;;  %v3984_v49 = vsub.s32 1, %v59_v26 }
  0xb5   :  { %v206_v57 = vshrl.u32 %v191_v54, 16  ;;  %v209_v58 = vshll.u32 %v191_v54, 16  ;;  %v204_v61 = vor.u32 %v203_v56, %v200_v55  ;;  %v70_v41 = vsub.s32 %v59_v26, %v69_v38  ;;  %v3569_v38 = vld [vmem:[#allocation3 + $0xf4] ss:$8 sps:$4 sm:$0xff]  }
  0xb6   :  { %v81_v42 = vsub.s32 %v60_v28, %v80_v39  ;;  %v91_v43 = vmul.u32 10, %v90_v40  ;;  %v301_v53 = vrot.slane %v296_v48, %v3982_v47  ;;  %v305_v54 = vrot.slane %v296_v48, %v3984_v49  ;;  %v3571_v40 = vld [vmem:[#allocation3 + $0xf0] ss:$8 sps:$4 sm:$0xff]  }
  0xb7   :  { %v208_v59 = vrot.slane %v206_v57, 3  ;;  %v211_v60 = vrot.slane %v209_v58, 4  ;;  %916 = vmatpush1.bf16.msra.mxu1 %v3541_v8  ;;  %vm95_vm9 = vcmp.ne.s32.totalorder %v70_v41, 0  ;;  %vm98_vm10 = vcmp.lt.s32.totalorder %v70_v41, 0 }
  0xb8   :  { %917 = vmatprep.subr.bf16.mxu1 %v3542_v9  ;;  %vm96_vm11 = vcmp.ne.s32.totalorder %v81_v42, 0  ;;  %vm99_vm12 = vcmp.lt.s32.totalorder %v81_v42, 0  ;;  %v104_v44 = vadd.s32 10, %v70_v41  ;;  %vm101_vm13 = vmand %vm98_vm10, %vm95_vm9  ;;  %v105_v45 = vadd.s32 10, %v81_v42 }
  0xb9   :  { %v212_v62 = vor.u32 %v211_v60, %v208_v59  ;;  %v92_v46 = vsub.s32 %v61_v33, %v91_v43  ;;  %vm102_vm14 = vmand %vm99_vm12, %vm96_vm11  ;;  %v320_v56 = vrot.slane %v315_v51, %v3982_v47  ;;  %v324_v58 = vrot.slane %v315_v51, %v3984_v49 }
  0xba   :  { %v107_v50 = vsel %vm101_vm13, %v104_v44, %v70_v41  ;;  %v108_v52 = vsel %vm102_vm14, %v105_v45, %v81_v42 }
  0xbb   :  { %v213_v63 = vsel %vm196_vm5, %v204_v61, %v212_v62  ;;  %918 = vmatpush1.bf16.msra.mxu1 %v3544_v10  ;;  %vm97_vm15 = vcmp.ne.s32.totalorder %v92_v46, 0  ;;  %vm100_vm0 = vcmp.lt.s32.totalorder %v92_v46, 0  ;;  %vm110_vm1 = vcmp.ge.s32.totalorder %v107_v50, 1 }
  0xbc   :  { %3012 = vmatmul.mubr.msk.bf16.vlgmr.msra.gmra.mrb[0].mxu0 %vm232_vm6, %v213_v63  ;;  %919 = vmatprep.subr.bf16.mxu1 %v3545_v11  ;;  %vm113_vm4 = vcmp.le.s32.totalorder %v107_v50, 8  ;;  %v106_v55 = vadd.s32 10, %v92_v46  ;;  %vm114_vm9 = vcmp.le.s32.totalorder %v108_v52, 8  ;;  %vm103_vm10 = vmand %vm100_vm0, %vm97_vm15  ;;  %v3574_v50 = vld [vmem:[#allocation3 + $0x100] ss:$8 sps:$4 sm:$0xff]   ;;  %vm439_vm0 = vcmask 523264  }
  0xbd   :  { %287 = vmatprep.mubr.bf16.mxu0 %v3874_v27  ;;  %vm116_vm11 = vmand %vm110_vm1, %vm113_vm4  ;;  %vm902_vm1 = vcmask 785408   ;;  %vm3878_vm4 = vmmov 0  }
  0xbe   :  { %v109_v63 = vsel %vm103_vm10, %v106_v55, %v92_v46  ;;  %v3991_v4 = vsel %vm116_vm11, 1.0, %v3871_v0  ;;  %v3572_v46 = vld [vmem:[#allocation3 + $0x104] ss:$8 sps:$4 sm:$0xff]   ;;  %vm2982_vm10 = vcmask 1024  }
  0xbf   :  { %920 = vmatpush1.bf16.msra.mxu1 %v3547_v12  ;;  %vm112_vm13 = vcmp.ge.s32.totalorder %v109_v63, 1  ;;  %vm115_vm14 = vcmp.le.s32.totalorder %v109_v63, 8  ;;  %v3566_v12 = vld [vmem:[#allocation3 + $0xe4] ss:$8 sps:$4 sm:$0xff]  }
  0xc0   :  { %921 = vmatprep.subr.bf16.mxu1 %v3548_v13  ;;  %v3568_v13 = vld [vmem:[#allocation3 + $0xe0] ss:$8 sps:$4 sm:$0xff]   ;;  %vm118_vm15 = vmand %vm112_vm13, %vm115_vm14 }
  0xc1   :  { %v4006_v30 = vsel %vm118_vm15, 1.0, %v3871_v0 }
  0xc3   :  { %922 = vmatpush1.bf16.msra.mxu1 %v3550_v14 }
  0xc4   :  { %3013 = vmatmul.mubr.msk.bf16.gmra.mrb[4].mxu0 %vm232_vm6, %v212_v62  ;;  %923 = vmatprep.subr.bf16.mxu1 %v3551_v15  ;;  %vm111_vm6 = vcmp.ge.s32.totalorder %v108_v52, 1 }
  0xc5   :  { %vm117_vm12 = vmand %vm111_vm6, %vm114_vm9  ;;  %vm2802_vm6 = vcmask 1040384   ;;  %vm2967_vm9 = vcmask 1041408  }
  0xc6   :  { %v3994_v8 = vsel %vm117_vm12, 1.0, %v3871_v0  ;;  %v351_v0 = vld [vmem:[#allocation2] sm:$0x80] }
  0xc7   :  { %924 = vmatpush1.bf16.msra.mxu1 %v3553_v16 }
  0xc8   :  { %925 = vmatprep.subr.bf16.mxu1 %v3554_v17 }
  0xcb   :  { %926 = vmatpush1.bf16.msra.mxu1 %v3556_v18 }
  0xcc   :  { %927 = vmatprep.subr.bf16.mxu1 %v3557_v19 }
  0xcf   :  { %928 = vmatpush1.bf16.msra.mxu1 %v3559_v20 }
  0xd0   :  { %929 = vmatprep.subr.bf16.mxu1 %v3560_v21 }
  0xd3   :  { %930 = vmatpush1.bf16.msra.mxu1 %v3562_v22 }
  0xd4   :  { %931 = vmatprep.subr.bf16.mxu1 %v3563_v23 }
  0xd7   :  { %932 = vmatpush1.bf16.msra.mxu1 %v3565_v24 }
  0xd8   :  { %933 = vmatprep.subr.bf16.mxu1 %v3566_v12 }
  0xdb   :  { %934 = vmatpush1.bf16.msra.mxu1 %v3568_v13  ;;  %v3580_v13 = vld [vmem:[#allocation3 + $0x124] ss:$8 sps:$4 sm:$0xff]  }
  0xdc   :  { %935 = vmatprep.subr.bf16.mxu1 %v3569_v38 }
  0xdf   :  { %936 = vmatpush1.bf16.msra.mxu1 %v3571_v40 }
  0xe0   :  { %937 = vmatprep.subr.bf16.mxu1 %v3572_v46 }
  0xe3   :  { %938 = vmatpush1.bf16.msra.mxu1 %v3574_v50 }
 0x18f   :  { %v279_v57 = vpop.f32.mrb[0].mxu0 }
 0x190   :  { %v308_v59 = vmul.f32 %v301_v53, %v279_v57  ;;  %v281_v60 = vpop.f32.mrb[1].mxu0 }
 0x191   :  { %v309_v61 = vmul.f32 %v305_v54, %v281_v60  ;;  %v283_v62 = vpop.f32.mrb[2].mxu0 }
 0x192   :  { %v327_v1 = vadd.f32 %v320_v56, %v308_v59  ;;  %v310_v2 = vmul.f32 %v301_v53, %v283_v62  ;;  %v285_v3 = vpop.f32.mrb[3].mxu0 }
 0x193   :  { %v328_v5 = vadd.f32 %v324_v58, %v309_v61  ;;  %v311_v6 = vmul.f32 %v305_v54, %v285_v3  ;;  %v3577_v3 = vld [vmem:[#allocation3 + $0x110] ss:$8 sps:$4 sm:$0xff]  }
 0x194   :  { %v333_v7 = vmax.f32 %v327_v1, 0.0  ;;  %v329_v9 = vadd.f32 %v320_v56, %v310_v2 }
 0x195   :  { %v334_v10 = vmax.f32 %v328_v5, 0.0  ;;  %v330_v11 = vadd.f32 %v324_v58, %v311_v6 }
 0x196   :  { %v339_v14 = vmul.f32 %v3991_v4, %v333_v7  ;;  %v335_v15 = vmax.f32 %v329_v9, 0.0 }
 0x197   :  { %v340_v16 = vmul.f32 %v3991_v4, %v334_v10  ;;  %v336_v17 = vmax.f32 %v330_v11, 0.0  ;;  %v289_v18 = vpop.f32.mrb[4].mxu0 }
 0x198   :  { %345 = vst [vmem:[#allocation2 + $0x10] sm:$0xff] %v339_v14  ;;  %v3999_v19 = vmul.f32 %v3994_v8, %v335_v15  ;;  %v312_v20 = vmul.f32 %v301_v53, %v289_v18  ;;  %v291_v21 = vpop.f32.mrb[5].mxu0  ;;  %v371_v28 = vrot.slane %v339_v14, 1  ;;  %v460_v48 = vpack.c.bf16 %v339_v14, %v351_v0 }
 0x199   :  { %346 = vst.msk [vmem:[#allocation2 + $0x18] sm:$0xff] %vm47_vm7, %v340_v16  ;;  %v342_v22 = vmul.f32 %v3994_v8, %v336_v17  ;;  %v313_v23 = vmul.f32 %v305_v54, %v291_v21  ;;  %v293_v24 = vpop.f32.mrb[6].mxu0 }
 0x19a   :  { %v331_v25 = vadd.f32 %v320_v56, %v312_v20  ;;  %v294_v26 = vpop.f32.mrb[7].mxu0  ;;  %v373_v29 = vrot.slane %v3999_v19, 1  ;;  %v415_v55 = vrot.slane %v3999_v19, 2  ;;  %v529_v63 = vshrl.u32 %v460_v48, 16 }
 0x19b   :  { %348 = vst.msk [vmem:[#allocation2 + $0x28] sm:$0xff] %vm47_vm7, %v342_v22  ;;  %v332_v31 = vadd.f32 %v324_v58, %v313_v23  ;;  %v3575_v58 = vld [vmem:[#allocation3 + $0x114] ss:$8 sps:$4 sm:$0xff]   ;;  %v532_v5 = vshll.u32 %v460_v48, 16 }
 0x19c   :  { %v337_v32 = vmax.f32 %v331_v25, 0.0  ;;  %v374_v33 = vsel %vm143_vm2, %v371_v28, %v373_v29  ;;  %939 = vmatprep.subr.bf16.mxu1 %v3575_v58  ;;  %v531_v17 = vrot.slane %v529_v63, 3 }
 0x19d   :  { %v338_v34 = vmax.f32 %v332_v31, 0.0  ;;  %v3394_v35 = vpack.i.bf16 %v374_v33, %v371_v28  ;;  %940 = vmatpush1.bf16.msra.mxu1 %v3577_v3  ;;  %v534_v18 = vrot.slane %v532_v5, 4 }
 0x19e   :  { %v343_v36 = vmul.f32 %v4006_v30, %v337_v32  ;;  %960 = vmatprep.subr.bf16.mxu1 %v3580_v13  ;;  %v3578_v13 = vld [vmem:[#allocation3 + $0x120] ss:$8 sps:$4 sm:$0xff]  }
 0x19f   :  { %v344_v37 = vmul.f32 %v4006_v30, %v338_v34  ;;  %3395 = vrot.lane.b32.xlu0 %v3394_v35, %s3875_s22  ;;  %v361_v42 = vld [vmem:[#allocation2 + $0x10] sm:$0xfe] }
 0x1a0   :  { %349 = vst [vmem:[#allocation2 + $0x30] sm:$0xf] %v343_v36  ;;  %v4012_v39 = vld [vmem:[#allocation2 + $0x18] sm:$0xff]  ;;  %v413_v53 = vrot.slane %v361_v42, 2 }
 0x1a1   :  { %350 = vst.msk [vmem:[#allocation2 + $0x38] sm:$0xf] %vm56_vm8, %v344_v37  ;;  %v372_v43 = vrot.slane %v4012_v39, 1  ;;  %v362_v45 = vld [vmem:[#allocation2 + $0x18] sm:$0xfe] }
 0x1a2   :  { %v4015_v41 = vld [vmem:[#allocation2 + $0x28] sm:$0xff]  ;;  %v414_v54 = vrot.slane %v362_v45, 2  ;;  %v416_v20 = vsel %vm163_vm3, %v413_v53, %v415_v55 }
 0x1a3   :  { %v375_v44 = vrot.slane %v4015_v41, 1  ;;  %v417_v60 = vrot.slane %v4015_v41, 2  ;;  %v352_v37 = vld [vmem:[#allocation2 + $0x8] sm:$0x80] }
 0x1a4   :  { %v3409_v7 = vpack.i.bf16 %v414_v54, %v413_v53 }
 0x1a5   :  { %v376_v51 = vsel %vm143_vm2, %v372_v43, %v375_v44  ;;  %v418_v14 = vsel %vm163_vm3, %v414_v54, %v417_v60 }
 0x1a6   :  { %v3404_v52 = vpack.i.bf16 %v376_v51, %v372_v43  ;;  %v3414_v24 = vpack.i.bf16 %v418_v14, %v416_v20 }
 0x1a7   :  { %v359_v56 = vld [vmem:[#allocation2 + $0x30] sm:$0xf] }
 0x1a8   :  { %v363_v57 = vld [vmem:[#allocation2 + $0x30] sm:$0x1f]  ;;  %3405 = vrot.lane.b32.xlu0 %v3404_v52, %s3875_s22  ;;  %v377_v59 = vrot.slane %v359_v56, 1  ;;  %v364_v61 = vld [vmem:[#allocation2 + $0x38] sm:$0x1f] }
 0x1a9   :  { %v419_v62 = vrot.slane %v363_v57, 2  ;;  %v421_v1 = vrot.slane %v364_v61, 2  ;;  %v360_v2 = vld [vmem:[#allocation2 + $0x38] sm:$0xf]  ;;  %v357_v9 = vld [vmem:[#allocation2 + $0x30] sm:$0x7] }
 0x1aa   :  { %v378_v6 = vsel %vm143_vm2, %v373_v29, %v377_v59  ;;  %v379_v15 = vrot.slane %v360_v2, 1  ;;  %v464_v16 = vpack.c.bf16 %v357_v9, %v3999_v19  ;;  %v535_v19 = vor.u32 %v534_v18, %v531_v17  ;;  %v358_v46 = vld [vmem:[#allocation2 + $0x38] sm:$0x7]  ;;  %v3583_v17 = vld [vmem:[#allocation3 + $0x134] ss:$8 sps:$4 sm:$0xff]  }
 0x1ab   :  { %v3399_v10 = vpack.i.bf16 %v377_v59, %v378_v6  ;;  %v420_v11 = vsel %vm163_vm3, %v415_v55, %v419_v62  ;;  %v422_v12 = vsel %vm163_vm3, %v417_v60, %v421_v1  ;;  %v3429_v33 = vpack.i.bf16 %v421_v1, %v419_v62 }
 0x1ac   :  { %3410 = vrot.lane.b32.xlu0 %v3409_v7, %s3876_s23  ;;  %v3424_v21 = vpack.i.bf16 %v422_v12, %v420_v11  ;;  %v537_v22 = vshrl.u32 %v464_v16, 16  ;;  %v540_v23 = vshll.u32 %v464_v16, 16  ;;  %v380_v25 = vsel %vm143_vm2, %v375_v44, %v379_v15 }
 0x1ad   :  { %3400 = vrot.lane.b32.xlu1 %v3399_v10, %s3875_s22  ;;  %v3419_v31 = vpack.i.bf16 %v379_v15, %v380_v25  ;;  %v3586_v25 = vld [vmem:[#allocation3 + $0x144] ss:$8 sps:$4 sm:$0xff]  }
 0x1ae   :  { %v539_v26 = vrot.slane %v537_v22, 3  ;;  %v542_v28 = vrot.slane %v540_v23, 4 }
 0x1b0   :  { %3425 = vrot.lane.b32.xlu0 %v3424_v21, %s3876_s23  ;;  %v4034_v29 = vor.u32 %v542_v28, %v539_v26 }
 0x1b1   :  { %3415 = vrot.lane.b32.xlu1 %v3414_v24, %s3876_s23  ;;  %v3581_v24 = vld [vmem:[#allocation3 + $0x130] ss:$8 sps:$4 sm:$0xff]  }
 0x1b2   :  { %v544_v32 = vsel %vm196_vm5, %v535_v19, %v4034_v29 }
 0x1b5   :  { %3420 = vrot.lane.b32.xlu1 %v3419_v31, %s3875_s22 }
 0x1b9   :  { %3430 = vrot.lane.b32.xlu1 %v3429_v33, %s3876_s23 }
 0x211   :  { %v4040_v34 = vpop.permute.xlu0 %3395 }
 0x212   :  { %v3398_v35 = vunpack.i.h.bf16 %v4040_v34  ;;  %v3397_v36 = vunpack.i.l.bf16 %v4040_v34  ;;  %v3619_v34 = vld [vmem:[#allocation3 + $0x1f4] ss:$8 sps:$4 sm:$0xff]  }
 0x214   :  { %v453_v38 = vsel %vm47_vm7, %v4012_v39, %v3398_v35  ;;  %v452_v40 = vsel %vm47_vm7, %v352_v37, %v3397_v36 }
 0x215   :  { %v461_v42 = vpack.c.bf16 %v453_v38, %v452_v40  ;;  %v3584_v38 = vld [vmem:[#allocation3 + $0x140] ss:$8 sps:$4 sm:$0xff]   ;;  %v3589_v40 = vld [vmem:[#allocation3 + $0x154] ss:$8 sps:$4 sm:$0xff]  }
 0x217   :  { %v546_v51 = vshrl.u32 %v461_v42, 16  ;;  %v549_v52 = vshll.u32 %v461_v42, 16 }
 0x219   :  { %v548_v61 = vrot.slane %v546_v51, 3  ;;  %v551_v62 = vrot.slane %v549_v52, 4  ;;  %v3590_v51 = vld [vmem:[#allocation3 + $0x160] ss:$8 sps:$4 sm:$0xff]   ;;  %v3595_v52 = vld [vmem:[#allocation3 + $0x174] ss:$8 sps:$4 sm:$0xff]  }
 0x21a   :  { %v4051_v0 = vpop.permute.xlu0 %3405 }
 0x21b   :  { %v552_v10 = vor.u32 %v551_v62, %v548_v61  ;;  %v3607_v61 = vld [vmem:[#allocation3 + $0x1b4] ss:$8 sps:$4 sm:$0xff]  }
 0x21e   :  { %v4057_v48 = vpop.permute.xlu0 %3410 }
 0x21f   :  { %v4053_v43 = vpop.permute.xlu1 %3400  ;;  %v3413_v55 = vunpack.i.h.bf16 %v4057_v48  ;;  %v3412_v56 = vunpack.i.l.bf16 %v4057_v48  ;;  %v3617_v48 = vld [vmem:[#allocation3 + $0x1f0] ss:$8 sps:$4 sm:$0xff]  }
 0x220   :  { %v3403_v44 = vunpack.i.h.bf16 %v4053_v43  ;;  %v3402_v45 = vunpack.i.l.bf16 %v4053_v43 }
 0x221   :  { %v440_v5 = vsel %vm439_vm0, %v3412_v56, %v3413_v55  ;;  %v3598_v55 = vld [vmem:[#allocation3 + $0x184] ss:$8 sps:$4 sm:$0xff]  }
 0x222   :  { %v454_v39 = vsel %vm47_vm7, %v4015_v41, %v3402_v45  ;;  %v455_v50 = vsel %vm47_vm7, %v358_v46, %v3403_v44  ;;  %v4075_v63 = vpop.permute.xlu0 %3425 }
 0x223   :  { %v465_v53 = vpack.c.bf16 %v455_v50, %v454_v39  ;;  %v4066_v54 = vpop.permute.xlu1 %3415  ;;  %v3428_v7 = vunpack.i.h.bf16 %v4075_v63  ;;  %v3427_v9 = vunpack.i.l.bf16 %v4075_v63  ;;  %v3592_v50 = vld [vmem:[#allocation3 + $0x164] ss:$8 sps:$4 sm:$0xff]  }
 0x224   :  { %v3418_v57 = vunpack.i.h.bf16 %v4066_v54  ;;  %v3417_v58 = vunpack.i.l.bf16 %v4066_v54  ;;  %v3611_v54 = vld [vmem:[#allocation3 + $0x1d0] ss:$8 sps:$4 sm:$0xff]  }
 0x225   :  { %v554_v59 = vshrl.u32 %v465_v53, 16  ;;  %v557_v41 = vshll.u32 %v465_v53, 16  ;;  %v442_v21 = vsel %vm439_vm0, %v3427_v9, %v3428_v7  ;;  %v3593_v53 = vld [vmem:[#allocation3 + $0x170] ss:$8 sps:$4 sm:$0xff]   ;;  %v3407_v7 = vunpack.i.l.bf16 %v4051_v0 }
 0x226   :  { %v441_v60 = vsel %vm439_vm0, %v3417_v58, %v3418_v57  ;;  %v3596_v57 = vld [vmem:[#allocation3 + $0x180] ss:$8 sps:$4 sm:$0xff]  }
 0x227   :  { %v4077_v1 = vpop.permute.xlu1 %3420  ;;  %v556_v2 = vrot.slane %v554_v59, 3  ;;  %v559_v3 = vrot.slane %v557_v41, 4  ;;  %v463_v6 = vpack.c.bf16 %v441_v60, %v440_v5  ;;  %v3599_v59 = vld [vmem:[#allocation3 + $0x190] ss:$8 sps:$4 sm:$0xff]   ;;  %v3604_v41 = vld [vmem:[#allocation3 + $0x1a4] ss:$8 sps:$4 sm:$0xff]  }
 0x228   :  { %v3602_v60 = vld [vmem:[#allocation3 + $0x1a0] ss:$8 sps:$4 sm:$0xff]   ;;  %v3423_v62 = vunpack.i.h.bf16 %v4077_v1  ;;  %v3605_v5 = vld [vmem:[#allocation3 + $0x1b0] ss:$8 sps:$4 sm:$0xff]  }
 0x229   :  { %v560_v11 = vor.u32 %v559_v3, %v556_v2  ;;  %v580_v18 = vshrl.u32 %v463_v6, 16  ;;  %v583_v20 = vshll.u32 %v463_v6, 16  ;;  %v3422_v2 = vunpack.i.l.bf16 %v4077_v1  ;;  %v3610_v6 = vld [vmem:[#allocation3 + $0x1c4] ss:$8 sps:$4 sm:$0xff]  }
 0x22a   :  { %v3408_v3 = vunpack.i.h.bf16 %v4051_v0 }
 0x22b   :  { %v4084_v12 = vpop.permute.xlu1 %3430  ;;  %v561_v16 = vsel %vm196_vm5, %v552_v10, %v560_v11  ;;  %v582_v26 = vrot.slane %v580_v18, 3  ;;  %v585_v28 = vrot.slane %v583_v20, 4  ;;  %v400_v10 = vsel %vm47_vm7, %v3403_v44, %v3423_v62  ;;  %v3613_v44 = vld [vmem:[#allocation3 + $0x1d4] ss:$8 sps:$4 sm:$0xff]   ;;  %v3614_v18 = vld [vmem:[#allocation3 + $0x1e0] ss:$8 sps:$4 sm:$0xff]  }
 0x22c   :  { %v3433_v14 = vunpack.i.h.bf16 %v4084_v12  ;;  %v3432_v15 = vunpack.i.l.bf16 %v4084_v12  ;;  %941 = vmatprep.mubr.bf16.mxu1 %v561_v16  ;;  %v1012_v62 = vld [vmem:[#allocation6 + $0x2] ss:$8 sm:$0x3] }
 0x22d   :  { %942 = vmatmul.mubr.bf16.vlgmr.msra.gmra.mrb[0].mxu1 %v544_v32  ;;  %v586_v42 = vor.u32 %v585_v28, %v582_v26  ;;  %v3587_v32 = vld [vmem:[#allocation3 + $0x150] ss:$8 sps:$4 sm:$0xff]   ;;  %v3622_v26 = vld [vmem:[#allocation3 + $0x204] ss:$8 sps:$4 sm:$0xff]   ;;  %v3625_v28 = vld [vmem:[#allocation3 + $0x214] ss:$8 sps:$4 sm:$0xff]  }
 0x22e   :  { %v443_v22 = vsel %vm439_vm0, %v3432_v15, %v3433_v14  ;;  %961 = vmatpush1.bf16.msra.mxu1 %v3578_v13  ;;  %951 = vmatprep.mubr.bf16.mxu1 %v560_v11  ;;  %v399_v11 = vsel %vm47_vm7, %v3402_v45, %v3422_v2  ;;  %v459_v1 = vsel %vm439_vm0, %v400_v10, %v3432_v15  ;;  %v3608_v14 = vld [vmem:[#allocation3 + $0x1c0] ss:$8 sps:$4 sm:$0xff]  }
 0x22f   :  { %v467_v23 = vpack.c.bf16 %v443_v22, %v442_v21  ;;  %962 = vmatprep.subr.bf16.mxu1 %v3583_v17  ;;  %v398_v13 = vsel %vm47_vm7, %v3398_v35, %v3408_v3  ;;  %v458_v43 = vsel %vm439_vm0, %v399_v11, %v3427_v9  ;;  %v397_v45 = vsel %vm47_vm7, %v3397_v36, %v3407_v7  ;;  %v1031_v2 = vld [vmem:[#allocation6 + $0x3] ss:$8 sm:$0x3] }
 0x230   :  { %v457_v0 = vsel %vm439_vm0, %v398_v13, %v3417_v58  ;;  %v466_v12 = vpack.c.bf16 %v459_v1, %v458_v43  ;;  %v456_v35 = vsel %vm439_vm0, %v397_v45, %v3412_v56  ;;  %v3616_v58 = vld [vmem:[#allocation3 + $0x1e4] ss:$8 sps:$4 sm:$0xff]   ;;  %1623 = vmatprep.subr.bf16.mxu0 %v3622_v26  ;;  %v1017_v3 = vrot.slane %v1012_v62, %v3982_v47 }
 0x231   :  { %v588_v19 = vshrl.u32 %v467_v23, 16  ;;  %v591_v31 = vshll.u32 %v467_v23, 16  ;;  %v462_v15 = vpack.c.bf16 %v457_v0, %v456_v35  ;;  %v1040_v10 = vrot.slane %v1031_v2, %v3984_v49 }
 0x232   :  { %963 = vmatpush1.bf16.msra.mxu1 %v3581_v24  ;;  %v571_v16 = vshrl.u32 %v466_v12, 16  ;;  %v574_v63 = vshll.u32 %v466_v12, 16 }
 0x233   :  { %v590_v33 = vrot.slane %v588_v19, 3  ;;  %v593_v37 = vrot.slane %v591_v31, 4  ;;  %964 = vmatprep.subr.bf16.mxu1 %v3586_v25  ;;  %v563_v17 = vshrl.u32 %v462_v15, 16  ;;  %v566_v9 = vshll.u32 %v462_v15, 16  ;;  %v3620_v25 = vld [vmem:[#allocation3 + $0x200] ss:$8 sps:$4 sm:$0xff]  }
 0x234   :  { %v573_v20 = vrot.slane %v571_v16, 3  ;;  %v576_v36 = vrot.slane %v574_v63, 4  ;;  %1624 = vmatpush1.bf16.msra.mxu0 %v3620_v25  ;;  %v3623_v19 = vld [vmem:[#allocation3 + $0x210] ss:$8 sps:$4 sm:$0xff]   ;;  %v3628_v31 = vld [vmem:[#allocation3 + $0x224] ss:$8 sps:$4 sm:$0xff]  }
 0x235   :  { %v4095_v46 = vor.u32 %v593_v37, %v590_v33  ;;  %952 = vmatmul.mubr.bf16.gmra.mrb[4].mxu1 %v4034_v29  ;;  %v3601_v29 = vld [vmem:[#allocation3 + $0x194] ss:$8 sps:$4 sm:$0xff]   ;;  %v565_v21 = vrot.slane %v563_v17, 3  ;;  %v568_v22 = vrot.slane %v566_v9, 4  ;;  %1625 = vmatprep.subr.bf16.mxu0 %v3625_v28  ;;  %v3626_v33 = vld [vmem:[#allocation3 + $0x220] ss:$8 sps:$4 sm:$0xff]  }
 0x236   :  { %965 = vmatpush1.bf16.msra.mxu1 %v3584_v38  ;;  %v577_v56 = vor.u32 %v576_v36, %v573_v20  ;;  %v3631_v37 = vld [vmem:[#allocation3 + $0x234] ss:$8 sps:$4 sm:$0xff]   ;;  %v3629_v38 = vld [vmem:[#allocation3 + $0x230] ss:$8 sps:$4 sm:$0xff]   ;;  %v3656_v16 = vld [vmem:[#allocation3 + $0x2c0] ss:$8 sps:$4 sm:$0xff]  }
 0x237   :  { %v595_v39 = vsel %vm196_vm5, %v586_v42, %v4095_v46  ;;  %966 = vmatprep.subr.bf16.mxu1 %v3589_v40  ;;  %v569_v23 = vor.u32 %v568_v22, %v565_v21  ;;  %v3634_v40 = vld [vmem:[#allocation3 + $0x244] ss:$8 sps:$4 sm:$0xff]   ;;  %v3632_v42 = vld [vmem:[#allocation3 + $0x240] ss:$8 sps:$4 sm:$0xff]  }
 0x238   :  { %3074 = vmatprep.mubr.msk.bf16.mxu1 %vm902_vm1, %v595_v39  ;;  %1626 = vmatpush1.bf16.msra.mxu0 %v3623_v19  ;;  %v3640_v39 = vld [vmem:[#allocation3 + $0x264] ss:$8 sps:$4 sm:$0xff]  }
 0x239   :  { %v578_v24 = vsel %vm196_vm5, %v569_v23, %v577_v56  ;;  %1627 = vmatprep.subr.bf16.mxu0 %v3628_v31  ;;  %v3658_v63 = vld [vmem:[#allocation3 + $0x2c4] ss:$8 sps:$4 sm:$0xff]   ;;  %v1067_v31 = vld [vmem:[#allocation2] sm:$0x80] }
 0x23a   :  { %967 = vmatpush1.bf16.msra.mxu1 %v3587_v32  ;;  %v3635_v32 = vld [vmem:[#allocation3 + $0x250] ss:$8 sps:$4 sm:$0xff]  }
 0x23b   :  { %968 = vmatprep.subr.bf16.mxu1 %v3592_v50  ;;  %v3638_v50 = vld [vmem:[#allocation3 + $0x260] ss:$8 sps:$4 sm:$0xff]  }
 0x23c   :  { %1628 = vmatpush1.bf16.msra.mxu0 %v3626_v33 }
 0x23d   :  { %1629 = vmatprep.subr.bf16.mxu0 %v3631_v37 }
 0x23e   :  { %969 = vmatpush1.bf16.msra.mxu1 %v3590_v51  ;;  %v3643_v51 = vld [vmem:[#allocation3 + $0x274] ss:$8 sps:$4 sm:$0xff]  }
 0x23f   :  { %970 = vmatprep.subr.bf16.mxu1 %v3595_v52  ;;  %v3641_v52 = vld [vmem:[#allocation3 + $0x270] ss:$8 sps:$4 sm:$0xff]  }
 0x240   :  { %1630 = vmatpush1.bf16.msra.mxu0 %v3629_v38 }
 0x241   :  { %1631 = vmatprep.subr.bf16.mxu0 %v3634_v40 }
 0x242   :  { %971 = vmatpush1.bf16.msra.mxu1 %v3593_v53  ;;  %v3646_v53 = vld [vmem:[#allocation3 + $0x284] ss:$8 sps:$4 sm:$0xff]  }
 0x243   :  { %972 = vmatprep.subr.bf16.mxu1 %v3598_v55  ;;  %v3644_v55 = vld [vmem:[#allocation3 + $0x280] ss:$8 sps:$4 sm:$0xff]  }
 0x244   :  { %1632 = vmatpush1.bf16.msra.mxu0 %v3632_v42 }
 0x246   :  { %973 = vmatpush1.bf16.msra.mxu1 %v3596_v57  ;;  %v3649_v57 = vld [vmem:[#allocation3 + $0x294] ss:$8 sps:$4 sm:$0xff]  }
 0x247   :  { %974 = vmatprep.subr.bf16.mxu1 %v3601_v29  ;;  %v3647_v29 = vld [vmem:[#allocation3 + $0x290] ss:$8 sps:$4 sm:$0xff]  }
 0x24a   :  { %975 = vmatpush1.bf16.msra.mxu1 %v3599_v59  ;;  %v3652_v59 = vld [vmem:[#allocation3 + $0x2a4] ss:$8 sps:$4 sm:$0xff]  }
 0x24b   :  { %976 = vmatprep.subr.bf16.mxu1 %v3604_v41  ;;  %v3650_v41 = vld [vmem:[#allocation3 + $0x2a0] ss:$8 sps:$4 sm:$0xff]  }
 0x24e   :  { %977 = vmatpush1.bf16.msra.mxu1 %v3602_v60  ;;  %v3655_v60 = vld [vmem:[#allocation3 + $0x2b4] ss:$8 sps:$4 sm:$0xff]  }
 0x24f   :  { %978 = vmatprep.subr.bf16.mxu1 %v3607_v61  ;;  %v3653_v61 = vld [vmem:[#allocation3 + $0x2b0] ss:$8 sps:$4 sm:$0xff]  }
 0x252   :  { %979 = vmatpush1.bf16.msra.mxu1 %v3605_v5  ;;  %v1021_v5 = vrot.slane %v1012_v62, %v3984_v49 }
 0x253   :  { %980 = vmatprep.subr.bf16.mxu1 %v3610_v6  ;;  %v1036_v6 = vrot.slane %v1031_v2, %v3982_v47  ;;  %v3662_v2 = vld [vmem:[#allocation3 + $0x2e0] ss:$8 sps:$4 sm:$0xff]  }
 0x256   :  { %981 = vmatpush1.bf16.msra.mxu1 %v3608_v14 }
 0x257   :  { %982 = vmatprep.subr.bf16.mxu1 %v3613_v44 }
 0x25a   :  { %983 = vmatpush1.bf16.msra.mxu1 %v3611_v54 }
 0x25b   :  { %984 = vmatprep.subr.bf16.mxu1 %v3616_v58 }
 0x25e   :  { %985 = vmatpush1.bf16.msra.mxu1 %v3614_v18 }
 0x25f   :  { %986 = vmatprep.subr.bf16.mxu1 %v3619_v34 }
 0x262   :  { %987 = vmatpush1.bf16.msra.mxu1 %v3617_v48 }
 0x265   :  { %993 = vmatmul.mubr.bf16.vlgmr.msra.gmra.mrb[0].mxu1 %v578_v24 }
 0x266   :  { %3075 = vmatprep.mubr.msk.bf16.mxu1 %vm902_vm1, %v4095_v46  ;;  %v3637_v46 = vld [vmem:[#allocation3 + $0x254] ss:$8 sps:$4 sm:$0xff]  }
 0x267   :  { %1633 = vmatprep.subr.bf16.mxu0 %v3637_v46 }
 0x268   :  { %1634 = vmatpush1.bf16.msra.mxu0 %v3635_v32 }
 0x269   :  { %1635 = vmatprep.subr.bf16.mxu0 %v3640_v39 }
 0x26c   :  { %1636 = vmatpush1.bf16.msra.mxu0 %v3638_v50  ;;  %v3661_v50 = vld [vmem:[#allocation3 + $0x2d4] ss:$8 sps:$4 sm:$0xff]  }
 0x26d   :  { %1003 = vmatmul.mubr.bf16.gmra.mrb[4].mxu1 %v577_v56  ;;  %1637 = vmatprep.subr.bf16.mxu0 %v3643_v51  ;;  %v3659_v51 = vld [vmem:[#allocation3 + $0x2d0] ss:$8 sps:$4 sm:$0xff]  }
 0x270   :  { %1638 = vmatpush1.bf16.msra.mxu0 %v3641_v52 }
 0x271   :  { %1639 = vmatprep.subr.bf16.mxu0 %v3646_v53 }
 0x274   :  { %1640 = vmatpush1.bf16.msra.mxu0 %v3644_v55 }
 0x275   :  { %1641 = vmatprep.subr.bf16.mxu0 %v3649_v57 }
 0x278   :  { %1642 = vmatpush1.bf16.msra.mxu0 %v3647_v29 }
 0x279   :  { %1643 = vmatprep.subr.bf16.mxu0 %v3652_v59 }
 0x27c   :  { %1644 = vmatpush1.bf16.msra.mxu0 %v3650_v41  ;;  %v3664_v41 = vld [vmem:[#allocation3 + $0x2e4] ss:$8 sps:$4 sm:$0xff]  }
 0x27d   :  { %1645 = vmatprep.subr.bf16.mxu0 %v3655_v60 }
 0x280   :  { %1646 = vmatpush1.bf16.msra.mxu0 %v3653_v61 }
 0x281   :  { %1647 = vmatprep.subr.bf16.mxu0 %v3658_v63 }
 0x284   :  { %1648 = vmatpush1.bf16.msra.mxu0 %v3656_v16  ;;  %v3667_v16 = vld [vmem:[#allocation3 + $0x2f4] ss:$8 sps:$4 sm:$0xff]  }
 0x285   :  { %1649 = vmatprep.subr.bf16.mxu0 %v3661_v50 }
 0x288   :  { %1650 = vmatpush1.bf16.msra.mxu0 %v3659_v51 }
 0x289   :  { %1651 = vmatprep.subr.bf16.mxu0 %v3664_v41 }
 0x28c   :  { %1652 = vmatpush1.bf16.msra.mxu0 %v3662_v2 }
 0x28d   :  { %1653 = vmatprep.subr.bf16.mxu0 %v3667_v16 }
 0x338   :  { %v994_v7 = vpop.f32.mrb[0].mxu1 }
 0x339   :  { %v1024_v11 = vmul.f32 %v1017_v3, %v994_v7  ;;  %v996_v1 = vpop.f32.mrb[1].mxu1 }
 0x33a   :  { %v1025_v13 = vmul.f32 %v1021_v5, %v996_v1  ;;  %v998_v14 = vpop.f32.mrb[2].mxu1 }
 0x33b   :  { %v1043_v0 = vadd.f32 %v1036_v6, %v1024_v11  ;;  %v1026_v43 = vmul.f32 %v1017_v3, %v998_v14  ;;  %v1000_v44 = vpop.f32.mrb[3].mxu1 }
 0x33c   :  { %v1044_v45 = vadd.f32 %v1040_v10, %v1025_v13  ;;  %v1027_v12 = vmul.f32 %v1021_v5, %v1000_v44 }
 0x33d   :  { %v1049_v35 = vmax.f32 %v1043_v0, 0.0  ;;  %v1045_v15 = vadd.f32 %v1036_v6, %v1026_v43 }
 0x33e   :  { %v1050_v54 = vmax.f32 %v1044_v45, 0.0  ;;  %v1046_v58 = vadd.f32 %v1040_v10, %v1027_v12 }
 0x33f   :  { %v1055_v17 = vmul.f32 %v3991_v4, %v1049_v35  ;;  %v1051_v9 = vmax.f32 %v1045_v15, 0.0  ;;  %v3665_v35 = vld [vmem:[#allocation3 + $0x2f0] ss:$8 sps:$4 sm:$0xff]  }
 0x340   :  { %v1056_v18 = vmul.f32 %v3991_v4, %v1050_v54  ;;  %v1052_v34 = vmax.f32 %v1046_v58, 0.0  ;;  %v1004_v20 = vpop.f32.mrb[4].mxu1  ;;  %1654 = vmatpush1.bf16.msra.mxu0 %v3665_v35 }
 0x341   :  { %1061 = vst [vmem:[#allocation2 + $0x10] sm:$0xff] %v1055_v17  ;;  %v4139_v36 = vmul.f32 %v3994_v8, %v1051_v9  ;;  %v1028_v21 = vmul.f32 %v1017_v3, %v1004_v20  ;;  %v1006_v22 = vpop.f32.mrb[5].mxu1  ;;  %v1087_v26 = vrot.slane %v1055_v17, 1  ;;  %v1175_v46 = vpack.c.bf16 %v1055_v17, %v1067_v31 }
 0x342   :  { %1062 = vst.msk [vmem:[#allocation2 + $0x18] sm:$0xff] %vm47_vm7, %v1056_v18  ;;  %v1058_v48 = vmul.f32 %v3994_v8, %v1052_v34  ;;  %v1029_v56 = vmul.f32 %v1021_v5, %v1006_v22  ;;  %v1008_v23 = vpop.f32.mrb[6].mxu1 }
 0x343   :  { %v1047_v24 = vadd.f32 %v1036_v6, %v1028_v21  ;;  %v1009_v25 = vpop.f32.mrb[7].mxu1  ;;  %v1089_v28 = vrot.slane %v4139_v36, 1  ;;  %v1244_v52 = vshrl.u32 %v1175_v46, 16  ;;  %v1247_v60 = vshll.u32 %v1175_v46, 16  ;;  %v3670_v21 = vld [vmem:[#allocation3 + $0x304] ss:$8 sps:$4 sm:$0xff]  }
 0x344   :  { %1064 = vst.msk [vmem:[#allocation2 + $0x28] sm:$0xff] %vm47_vm7, %v1058_v48  ;;  %v1048_v19 = vadd.f32 %v1040_v10, %v1029_v56  ;;  %v1131_v62 = vrot.slane %v4139_v36, 2  ;;  %1674 = vmatprep.subr.bf16.mxu0 %v3670_v21 }
 0x345   :  { %v1053_v33 = vmax.f32 %v1047_v24, 0.0  ;;  %v1090_v37 = vsel %vm143_vm2, %v1087_v26, %v1089_v28  ;;  %v1246_v7 = vrot.slane %v1244_v52, 3  ;;  %v1249_v15 = vrot.slane %v1247_v60, 4 }
 0x346   :  { %v1054_v38 = vmax.f32 %v1048_v19, 0.0  ;;  %v3434_v40 = vpack.i.bf16 %v1090_v37, %v1087_v26 }
 0x347   :  { %v1059_v42 = vmul.f32 %v4006_v30, %v1053_v33  ;;  %v1250_v24 = vor.u32 %v1249_v15, %v1246_v7 }
 0x348   :  { %v1060_v32 = vmul.f32 %v4006_v30, %v1054_v38  ;;  %3435 = vrot.lane.b32.xlu0 %v3434_v40, %s3875_s22  ;;  %v1077_v29 = vld [vmem:[#allocation2 + $0x10] sm:$0xfe] }
 0x349   :  { %1065 = vst [vmem:[#allocation2 + $0x30] sm:$0xf] %v1059_v42  ;;  %v4149_v39 = vld [vmem:[#allocation2 + $0x18] sm:$0xff]  ;;  %v1129_v5 = vrot.slane %v1077_v29, 2  ;;  %v1068_v42 = vld [vmem:[#allocation2 + $0x8] sm:$0x80] }
 0x34a   :  { %1066 = vst.msk [vmem:[#allocation2 + $0x38] sm:$0xf] %vm56_vm8, %v1060_v32  ;;  %v1088_v55 = vrot.slane %v4149_v39, 1  ;;  %v1078_v59 = vld [vmem:[#allocation2 + $0x18] sm:$0xfe] }
 0x34b   :  { %v4152_v53 = vld [vmem:[#allocation2 + $0x28] sm:$0xff]  ;;  %v1130_v6 = vrot.slane %v1078_v59, 2  ;;  %v1132_v56 = vsel %vm163_vm3, %v1129_v5, %v1131_v62 }
 0x34c   :  { %v1091_v57 = vrot.slane %v4152_v53, 1  ;;  %v1133_v14 = vrot.slane %v4152_v53, 2 }
 0x34d   :  { %v3449_v58 = vpack.i.bf16 %v1130_v6, %v1129_v5 }
 0x34e   :  { %v1092_v61 = vsel %vm143_vm2, %v1088_v55, %v1091_v57  ;;  %v1134_v20 = vsel %vm163_vm3, %v1130_v6, %v1133_v14 }
 0x34f   :  { %v3444_v3 = vpack.i.bf16 %v1092_v61, %v1088_v55  ;;  %v3454_v26 = vpack.i.bf16 %v1134_v20, %v1132_v56  ;;  %v3671_v56 = vld [vmem:[#allocation3 + $0x310] ss:$8 sps:$4 sm:$0xff]  }
 0x350   :  { %v1075_v10 = vld [vmem:[#allocation2 + $0x30] sm:$0xf] }
 0x351   :  { %v1079_v11 = vld [vmem:[#allocation2 + $0x30] sm:$0x1f]  ;;  %3445 = vrot.lane.b32.xlu0 %v3444_v3, %s3875_s22  ;;  %v1093_v13 = vrot.slane %v1075_v10, 1  ;;  %v1080_v0 = vld [vmem:[#allocation2 + $0x38] sm:$0x1f] }
 0x352   :  { %v1073_v1 = vld [vmem:[#allocation2 + $0x30] sm:$0x7]  ;;  %v1135_v43 = vrot.slane %v1079_v11, 2  ;;  %v1137_v45 = vrot.slane %v1080_v0, 2  ;;  %v1076_v12 = vld [vmem:[#allocation2 + $0x38] sm:$0xf] }
 0x353   :  { %v1179_v44 = vpack.c.bf16 %v1073_v1, %v4139_v36  ;;  %v1094_v54 = vsel %vm143_vm2, %v1089_v28, %v1093_v13  ;;  %v1095_v36 = vrot.slane %v1076_v12, 1  ;;  %v1074_v29 = vld [vmem:[#allocation2 + $0x38] sm:$0x7] }
 0x354   :  { %v3439_v9 = vpack.i.bf16 %v1093_v13, %v1094_v54  ;;  %v1136_v18 = vsel %vm163_vm3, %v1131_v62, %v1135_v43  ;;  %v1138_v34 = vsel %vm163_vm3, %v1133_v14, %v1137_v45  ;;  %v3469_v33 = vpack.i.bf16 %v1137_v45, %v1135_v43 }
 0x355   :  { %v1252_v63 = vshrl.u32 %v1179_v44, 16  ;;  %v1255_v17 = vshll.u32 %v1179_v44, 16  ;;  %3450 = vrot.lane.b32.xlu0 %v3449_v58, %s3876_s23  ;;  %v3464_v23 = vpack.i.bf16 %v1138_v34, %v1136_v18  ;;  %v1096_v28 = vsel %vm143_vm2, %v1091_v57, %v1095_v36  ;;  %v3673_v34 = vld [vmem:[#allocation3 + $0x314] ss:$8 sps:$4 sm:$0xff]  }
 0x356   :  { %3440 = vrot.lane.b32.xlu1 %v3439_v9, %s3875_s22  ;;  %v3459_v31 = vpack.i.bf16 %v1095_v36, %v1096_v28 }
 0x357   :  { %v1254_v22 = vrot.slane %v1252_v63, 3  ;;  %v1257_v48 = vrot.slane %v1255_v17, 4  ;;  %v3668_v63 = vld [vmem:[#allocation3 + $0x300] ss:$8 sps:$4 sm:$0xff]  }
 0x359   :  { %v4168_v25 = vor.u32 %v1257_v48, %v1254_v22  ;;  %3465 = vrot.lane.b32.xlu0 %v3464_v23, %s3876_s23  ;;  %v3676_v23 = vld [vmem:[#allocation3 + $0x324] ss:$8 sps:$4 sm:$0xff]  }
 0x35a   :  { %3455 = vrot.lane.b32.xlu1 %v3454_v26, %s3876_s23 }
 0x35b   :  { %v1259_v19 = vsel %vm196_vm5, %v1250_v24, %v4168_v25 }
 0x35e   :  { %3460 = vrot.lane.b32.xlu1 %v3459_v31, %s3875_s22 }
 0x362   :  { %3470 = vrot.lane.b32.xlu1 %v3469_v33, %s3876_s23 }
 0x3ba   :  { %v4177_v37 = vpop.permute.xlu0 %3435 }
 0x3bb   :  { %v3438_v38 = vunpack.i.h.bf16 %v4177_v37  ;;  %v3437_v40 = vunpack.i.l.bf16 %v4177_v37  ;;  %v3709_v37 = vld [vmem:[#allocation3 + $0x3d4] ss:$8 sps:$4 sm:$0xff]  }
 0x3bd   :  { %v1168_v46 = vsel %vm47_vm7, %v4149_v39, %v3438_v38  ;;  %v1167_v32 = vsel %vm47_vm7, %v1068_v42, %v3437_v40 }
 0x3be   :  { %v1176_v51 = vpack.c.bf16 %v1168_v46, %v1167_v32  ;;  %v3674_v46 = vld [vmem:[#allocation3 + $0x320] ss:$8 sps:$4 sm:$0xff]   ;;  %v3679_v32 = vld [vmem:[#allocation3 + $0x334] ss:$8 sps:$4 sm:$0xff]  }
 0x3c0   :  { %v1261_v60 = vshrl.u32 %v1176_v51, 16  ;;  %v1264_v61 = vshll.u32 %v1176_v51, 16 }
 0x3c2   :  { %v1263_v1 = vrot.slane %v1261_v60, 3  ;;  %v1266_v13 = vrot.slane %v1264_v61, 4  ;;  %v3680_v60 = vld [vmem:[#allocation3 + $0x340] ss:$8 sps:$4 sm:$0xff]   ;;  %v3685_v61 = vld [vmem:[#allocation3 + $0x354] ss:$8 sps:$4 sm:$0xff]  }
 0x3c3   :  { %v4188_v50 = vpop.permute.xlu0 %3445 }
 0x3c4   :  { %v1267_v54 = vor.u32 %v1266_v13, %v1263_v1  ;;  %v3697_v1 = vld [vmem:[#allocation3 + $0x394] ss:$8 sps:$4 sm:$0xff]  }
 0x3c7   :  { %v4194_v59 = vpop.permute.xlu0 %3450 }
 0x3c8   :  { %v4190_v52 = vpop.permute.xlu1 %3440  ;;  %v3453_v3 = vunpack.i.h.bf16 %v4194_v59  ;;  %v3452_v5 = vunpack.i.l.bf16 %v4194_v59  ;;  %v3707_v59 = vld [vmem:[#allocation3 + $0x3d0] ss:$8 sps:$4 sm:$0xff]  }
 0x3c9   :  { %v3443_v55 = vunpack.i.h.bf16 %v4190_v52  ;;  %v3442_v57 = vunpack.i.l.bf16 %v4190_v52 }
 0x3ca   :  { %v1155_v45 = vsel %vm439_vm0, %v3452_v5, %v3453_v3  ;;  %v3688_v3 = vld [vmem:[#allocation3 + $0x364] ss:$8 sps:$4 sm:$0xff]  }
 0x3cb   :  { %v1169_v39 = vsel %vm47_vm7, %v4152_v53, %v3442_v57  ;;  %v1170_v41 = vsel %vm47_vm7, %v1074_v29, %v3443_v55  ;;  %v4212_v14 = vpop.permute.xlu0 %3465 }
 0x3cc   :  { %v1180_v62 = vpack.c.bf16 %v1170_v41, %v1169_v39  ;;  %v4203_v2 = vpop.permute.xlu1 %3455  ;;  %v3468_v35 = vunpack.i.h.bf16 %v4212_v14  ;;  %v3467_v15 = vunpack.i.l.bf16 %v4212_v14  ;;  %v3682_v41 = vld [vmem:[#allocation3 + $0x344] ss:$8 sps:$4 sm:$0xff]  }
 0x3cd   :  { %v3458_v6 = vunpack.i.h.bf16 %v4203_v2  ;;  %v3457_v7 = vunpack.i.l.bf16 %v4203_v2  ;;  %v3701_v2 = vld [vmem:[#allocation3 + $0x3b0] ss:$8 sps:$4 sm:$0xff]  }
 0x3ce   :  { %v1269_v10 = vshrl.u32 %v1180_v62, 16  ;;  %v1272_v11 = vshll.u32 %v1180_v62, 16  ;;  %v1157_v21 = vsel %vm439_vm0, %v3467_v15, %v3468_v35  ;;  %v3683_v62 = vld [vmem:[#allocation3 + $0x350] ss:$8 sps:$4 sm:$0xff]   ;;  %v3447_v35 = vunpack.i.l.bf16 %v4188_v50 }
 0x3cf   :  { %v1156_v53 = vsel %vm439_vm0, %v3457_v7, %v3458_v6  ;;  %v3686_v6 = vld [vmem:[#allocation3 + $0x360] ss:$8 sps:$4 sm:$0xff]  }
 0x3d0   :  { %v4214_v0 = vpop.permute.xlu1 %3460  ;;  %v1271_v43 = vrot.slane %v1269_v10, 3  ;;  %v1274_v44 = vrot.slane %v1272_v11, 4  ;;  %v1178_v12 = vpack.c.bf16 %v1156_v53, %v1155_v45  ;;  %v3689_v10 = vld [vmem:[#allocation3 + $0x370] ss:$8 sps:$4 sm:$0xff]   ;;  %v3694_v11 = vld [vmem:[#allocation3 + $0x384] ss:$8 sps:$4 sm:$0xff]  }
 0x3d1   :  { %v3692_v53 = vld [vmem:[#allocation3 + $0x380] ss:$8 sps:$4 sm:$0xff]   ;;  %v3463_v13 = vunpack.i.h.bf16 %v4214_v0  ;;  %v3695_v45 = vld [vmem:[#allocation3 + $0x390] ss:$8 sps:$4 sm:$0xff]  }
 0x3d2   :  { %v1275_v58 = vor.u32 %v1274_v44, %v1271_v43  ;;  %v1295_v20 = vshrl.u32 %v1178_v12, 16  ;;  %v1298_v36 = vshll.u32 %v1178_v12, 16  ;;  %v3462_v43 = vunpack.i.l.bf16 %v4214_v0  ;;  %v3700_v12 = vld [vmem:[#allocation3 + $0x3a4] ss:$8 sps:$4 sm:$0xff]  }
 0x3d3   :  { %v3448_v44 = vunpack.i.h.bf16 %v4188_v50 }
 0x3d4   :  { %v4221_v16 = vpop.permute.xlu1 %3470  ;;  %v1276_v18 = vsel %vm196_vm5, %v1267_v54, %v1275_v58  ;;  %v1297_v24 = vrot.slane %v1295_v20, 3  ;;  %v1300_v26 = vrot.slane %v1298_v36, 4  ;;  %v1116_v54 = vsel %vm47_vm7, %v3443_v55, %v3463_v13  ;;  %v3703_v55 = vld [vmem:[#allocation3 + $0x3b4] ss:$8 sps:$4 sm:$0xff]   ;;  %v3704_v20 = vld [vmem:[#allocation3 + $0x3c0] ss:$8 sps:$4 sm:$0xff]  }
 0x3d5   :  { %v3473_v17 = vunpack.i.h.bf16 %v4221_v16  ;;  %v3472_v9 = vunpack.i.l.bf16 %v4221_v16  ;;  %1655 = vmatprep.mubr.bf16.mxu0 %v1276_v18  ;;  %v3732_v13 = vld [vmem:[#allocation3 + $0x580] ss:$8 sps:$4 sm:$0xff]  }
 0x3d6   :  { %1656 = vmatmul.mubr.bf16.vlgmr.msra.gmra.mrb[8].mxu0 %v1259_v19  ;;  %v1301_v51 = vor.u32 %v1300_v26, %v1297_v24  ;;  %v3677_v19 = vld [vmem:[#allocation3 + $0x330] ss:$8 sps:$4 sm:$0xff]   ;;  %v3715_v24 = vld [vmem:[#allocation3 + $0x460] ss:$8 sps:$4 sm:$0xff]  }
 0x3d7   :  { %v1158_v22 = vsel %vm439_vm0, %v3472_v9, %v3473_v17  ;;  %1675 = vmatpush1.bf16.msra.mxu0 %v3668_v63  ;;  %1665 = vmatprep.mubr.bf16.mxu0 %v1275_v58  ;;  %v1115_v58 = vsel %vm47_vm7, %v3442_v57, %v3462_v43  ;;  %v1174_v0 = vsel %vm439_vm0, %v1116_v54, %v3472_v9  ;;  %v3698_v17 = vld [vmem:[#allocation3 + $0x3a0] ss:$8 sps:$4 sm:$0xff]   ;;  %v3711_v26 = vld [vmem:[#allocation3 + $0x4f0] ss:$8 sps:$4 sm:$0xff]  }
 0x3d8   :  { %v1182_v48 = vpack.c.bf16 %v1158_v22, %v1157_v21  ;;  %1676 = vmatprep.subr.bf16.mxu0 %v3673_v34  ;;  %v1114_v63 = vsel %vm47_vm7, %v3438_v38, %v3448_v44  ;;  %v1173_v52 = vsel %vm439_vm0, %v1115_v58, %v3467_v15  ;;  %v1113_v57 = vsel %vm47_vm7, %v3437_v40, %v3447_v35  ;;  %v1726_v43 = vld [vmem:[#allocation6 + $0x4] ss:$8 sm:$0x3]  ;;  %v1745_v44 = vld [vmem:[#allocation6 + $0x5] ss:$8 sm:$0x3] }
 0x3d9   :  { %v1172_v50 = vsel %vm439_vm0, %v1114_v63, %v3457_v7  ;;  %v1181_v16 = vpack.c.bf16 %v1174_v0, %v1173_v52  ;;  %v1171_v38 = vsel %vm439_vm0, %v1113_v57, %v3452_v5  ;;  %v3706_v7 = vld [vmem:[#allocation3 + $0x3c4] ss:$8 sps:$4 sm:$0xff]   ;;  %3218 = vmatprep.subr.bf16.mxu1 %v3715_v24  ;;  %v1750_v35 = vrot.slane %v1745_v44, %v3982_v47 }
 0x3da   :  { %v1303_v28 = vshrl.u32 %v1182_v48, 16  ;;  %v1306_v31 = vshll.u32 %v1182_v48, 16  ;;  %v1177_v9 = vpack.c.bf16 %v1172_v50, %v1171_v38  ;;  %v1754_v58 = vrot.slane %v1745_v44, %v3984_v49 }
 0x3db   :  { %1677 = vmatpush1.bf16.msra.mxu0 %v3671_v56  ;;  %v1286_v18 = vshrl.u32 %v1181_v16, 16  ;;  %v1289_v14 = vshll.u32 %v1181_v16, 16 }
 0x3dc   :  { %v1305_v33 = vrot.slane %v1303_v28, 3  ;;  %v1308_v42 = vrot.slane %v1306_v31, 4  ;;  %1678 = vmatprep.subr.bf16.mxu0 %v3676_v23  ;;  %v1278_v34 = vshrl.u32 %v1177_v9, 16  ;;  %v1281_v15 = vshll.u32 %v1177_v9, 16  ;;  %v3710_v23 = vld [vmem:[#allocation3 + $0x4e0] ss:$8 sps:$4 sm:$0xff]  }
 0x3dd   :  { %v1288_v36 = vrot.slane %v1286_v18, 3  ;;  %v1291_v40 = vrot.slane %v1289_v14, 4  ;;  %v3716_v28 = vld [vmem:[#allocation3 + $0x3e0] ss:$8 sps:$4 sm:$0xff]   ;;  %v3718_v31 = vld [vmem:[#allocation3 + $0x470] ss:$8 sps:$4 sm:$0xff]  }
 0x3de   :  { %v4232_v29 = vor.u32 %v1308_v42, %v1305_v33  ;;  %1666 = vmatmul.mubr.bf16.gmra.mrb[12].mxu0 %v4168_v25  ;;  %v3691_v25 = vld [vmem:[#allocation3 + $0x374] ss:$8 sps:$4 sm:$0xff]   ;;  %v1280_v21 = vrot.slane %v1278_v34, 3  ;;  %v1283_v22 = vrot.slane %v1281_v15, 4  ;;  %3219 = vmatpush3.bf16.msra.mxu1 %v3716_v28  ;;  %v3719_v33 = vld [vmem:[#allocation3 + $0x3f0] ss:$8 sps:$4 sm:$0xff]  }
 0x3df   :  { %1679 = vmatpush1.bf16.msra.mxu0 %v3674_v46  ;;  %v1292_v5 = vor.u32 %v1291_v40, %v1288_v36  ;;  %3220 = vmatprep.subr.bf16.mxu1 %v3718_v31  ;;  %v3721_v42 = vld [vmem:[#allocation3 + $0x480] ss:$8 sps:$4 sm:$0xff]  }
 0x3e0   :  { %v1310_v39 = vsel %vm196_vm5, %v1301_v51, %v4232_v29  ;;  %1680 = vmatprep.subr.bf16.mxu0 %v3679_v32  ;;  %v1284_v48 = vor.u32 %v1283_v22, %v1280_v21  ;;  %v3712_v46 = vld [vmem:[#allocation3 + $0x500] ss:$8 sps:$4 sm:$0xff]   ;;  %v3724_v51 = vld [vmem:[#allocation3 + $0x490] ss:$8 sps:$4 sm:$0xff]  }
 0x3e1   :  { %3136 = vmatprep.mubr.msk.bf16.mxu0 %vm902_vm1, %v1310_v39  ;;  %v3722_v32 = vld [vmem:[#allocation3 + $0x400] ss:$8 sps:$4 sm:$0xff]  }
 0x3e2   :  { %v1293_v56 = vsel %vm196_vm5, %v1284_v48, %v1292_v5  ;;  %3221 = vmatpush3.bf16.msra.mxu1 %v3719_v33  ;;  %v3727_v39 = vld [vmem:[#allocation3 + $0x4a0] ss:$8 sps:$4 sm:$0xff]   ;;  %v3735_v33 = vld [vmem:[#allocation3 + $0x590] ss:$8 sps:$4 sm:$0xff]   ;;  %vm2236_vm5 = vcmask 781312  }
 0x3e3   :  { %1681 = vmatpush1.bf16.msra.mxu0 %v3677_v19  ;;  %3222 = vmatprep.subr.bf16.mxu1 %v3721_v42  ;;  %v3725_v19 = vld [vmem:[#allocation3 + $0x410] ss:$8 sps:$4 sm:$0xff]  }
 0x3e4   :  { %1682 = vmatprep.subr.bf16.mxu0 %v3682_v41  ;;  %v3714_v41 = vld [vmem:[#allocation3 + $0x520] ss:$8 sps:$4 sm:$0xff]   ;;  %v3737_v42 = vld [vmem:[#allocation3 + $0x450] ss:$8 sps:$4 sm:$0xff]  }
 0x3e6   :  { %3223 = vmatpush3.bf16.msra.mxu1 %v3722_v32 }
 0x3e7   :  { %1683 = vmatpush1.bf16.msra.mxu0 %v3680_v60  ;;  %3224 = vmatprep.subr.bf16.mxu1 %v3724_v51  ;;  %v3728_v60 = vld [vmem:[#allocation3 + $0x420] ss:$8 sps:$4 sm:$0xff]  }
 0x3e8   :  { %1684 = vmatprep.subr.bf16.mxu0 %v3685_v61  ;;  %v3730_v61 = vld [vmem:[#allocation3 + $0x4b0] ss:$8 sps:$4 sm:$0xff]   ;;  %v3738_v51 = vld [vmem:[#allocation3 + $0x5a0] ss:$8 sps:$4 sm:$0xff]  }
 0x3ea   :  { %3225 = vmatpush3.bf16.msra.mxu1 %v3725_v19 }
 0x3eb   :  { %1685 = vmatpush1.bf16.msra.mxu0 %v3683_v62  ;;  %3226 = vmatprep.subr.bf16.mxu1 %v3727_v39  ;;  %v3717_v62 = vld [vmem:[#allocation3 + $0x530] ss:$8 sps:$4 sm:$0xff]  }
 0x3ec   :  { %1686 = vmatprep.subr.bf16.mxu0 %v3688_v3  ;;  %v3731_v3 = vld [vmem:[#allocation3 + $0x430] ss:$8 sps:$4 sm:$0xff]  }
 0x3ee   :  { %3227 = vmatpush3.bf16.msra.mxu1 %v3728_v60 }
 0x3ef   :  { %1687 = vmatpush1.bf16.msra.mxu0 %v3686_v6  ;;  %3228 = vmatprep.subr.bf16.mxu1 %v3730_v61  ;;  %v3733_v6 = vld [vmem:[#allocation3 + $0x4c0] ss:$8 sps:$4 sm:$0xff]  }
 0x3f0   :  { %1688 = vmatprep.subr.bf16.mxu0 %v3691_v25  ;;  %v3720_v25 = vld [vmem:[#allocation3 + $0x540] ss:$8 sps:$4 sm:$0xff]  }
 0x3f2   :  { %3229 = vmatpush3.bf16.msra.mxu1 %v3731_v3  ;;  %v3739_v3 = vld [vmem:[#allocation3 + $0x5b0] ss:$8 sps:$4 sm:$0xff]  }
 0x3f3   :  { %1689 = vmatpush1.bf16.msra.mxu0 %v3689_v10  ;;  %v3734_v10 = vld [vmem:[#allocation3 + $0x440] ss:$8 sps:$4 sm:$0xff]   ;;  %3230 = vmatprep.subr.bf16.mxu1 %v3733_v6 }
 0x3f4   :  { %1690 = vmatprep.subr.bf16.mxu0 %v3694_v11  ;;  %v3723_v11 = vld [vmem:[#allocation3 + $0x550] ss:$8 sps:$4 sm:$0xff]  }
 0x3f6   :  { %3231 = vmatpush3.bf16.msra.mxu1 %v3734_v10 }
 0x3f7   :  { %1691 = vmatpush1.bf16.msra.mxu0 %v3692_v53  ;;  %v3726_v53 = vld [vmem:[#allocation3 + $0x560] ss:$8 sps:$4 sm:$0xff]  }
 0x3f8   :  { %1692 = vmatprep.subr.bf16.mxu0 %v3697_v1  ;;  %v3729_v1 = vld [vmem:[#allocation3 + $0x570] ss:$8 sps:$4 sm:$0xff]  }
 0x3fb   :  { %1693 = vmatpush1.bf16.msra.mxu0 %v3695_v45  ;;  %v1731_v45 = vrot.slane %v1726_v43, %v3982_v47 }
 0x3fc   :  { %1694 = vmatprep.subr.bf16.mxu0 %v3700_v12  ;;  %v1735_v12 = vrot.slane %v1726_v43, %v3984_v49 }
 0x3ff   :  { %1695 = vmatpush1.bf16.msra.mxu0 %v3698_v17 }
 0x400   :  { %1696 = vmatprep.subr.bf16.mxu0 %v3703_v55 }
 0x403   :  { %1697 = vmatpush1.bf16.msra.mxu0 %v3701_v2 }
 0x404   :  { %1698 = vmatprep.subr.bf16.mxu0 %v3706_v7 }
 0x407   :  { %1699 = vmatpush1.bf16.msra.mxu0 %v3704_v20 }
 0x408   :  { %1700 = vmatprep.subr.bf16.mxu0 %v3709_v37 }
 0x40b   :  { %1701 = vmatpush1.bf16.msra.mxu0 %v3707_v59 }
 0x40c   :  { %2175 = vmatprep.subr.bf16.mxu0 %v3874_v27 }
 0x40e   :  { %1707 = vmatmul.mubr.bf16.vlgmr.msra.gmra.mrb[8].mxu0 %v1293_v56 }
 0x40f   :  { %3137 = vmatprep.mubr.msk.bf16.mxu0 %vm902_vm1, %v4232_v29  ;;  %2176 = vmatpush1.bf16.msra.mxu0 %v3710_v23  ;;  %v3713_v29 = vld [vmem:[#allocation3 + $0x510] ss:$8 sps:$4 sm:$0xff]  }
 0x410   :  { %2177 = vmatprep.subr.bf16.mxu0 %v3874_v27 }
 0x413   :  { %2178 = vmatpush1.bf16.msra.mxu0 %v3711_v26 }
 0x414   :  { %2179 = vmatprep.subr.bf16.mxu0 %v3874_v27 }
 0x416   :  { %1717 = vmatmul.mubr.bf16.gmra.mrb[12].mxu0 %v1292_v5 }
 0x417   :  { %2180 = vmatpush1.bf16.msra.mxu0 %v3712_v46 }
 0x418   :  { %2181 = vmatprep.subr.bf16.mxu0 %v3874_v27 }
 0x41b   :  { %2182 = vmatpush1.bf16.msra.mxu0 %v3713_v29 }
 0x41c   :  { %2183 = vmatprep.subr.bf16.mxu0 %v3874_v27 }
 0x41f   :  { %2184 = vmatpush1.bf16.msra.mxu0 %v3714_v41 }
 0x420   :  { %2185 = vmatprep.subr.bf16.mxu0 %v3874_v27 }
 0x423   :  { %2186 = vmatpush1.bf16.msra.mxu0 %v3717_v62 }
 0x424   :  { %2187 = vmatprep.subr.bf16.mxu0 %v3874_v27 }
 0x427   :  { %2188 = vmatpush1.bf16.msra.mxu0 %v3720_v25 }
 0x428   :  { %2189 = vmatprep.subr.bf16.mxu0 %v3874_v27 }
 0x42b   :  { %2190 = vmatpush1.bf16.msra.mxu0 %v3723_v11 }
 0x42c   :  { %2191 = vmatprep.subr.bf16.mxu0 %v3874_v27 }
 0x42f   :  { %2192 = vmatpush1.bf16.msra.mxu0 %v3726_v53 }
 0x430   :  { %2193 = vmatprep.subr.bf16.mxu0 %v3874_v27 }
 0x433   :  { %2194 = vmatpush1.bf16.msra.mxu0 %v3729_v1 }
 0x434   :  { %2195 = vmatprep.subr.bf16.mxu0 %v3874_v27 }
 0x437   :  { %2196 = vmatpush1.bf16.msra.mxu0 %v3732_v13 }
 0x438   :  { %2197 = vmatprep.subr.bf16.mxu0 %v3874_v27 }
 0x43b   :  { %2198 = vmatpush1.bf16.msra.mxu0 %v3735_v33 }
 0x43c   :  { %2199 = vmatprep.subr.bf16.mxu0 %v3874_v27 }
 0x43f   :  { %2200 = vmatpush1.bf16.msra.mxu0 %v3738_v51 }
 0x440   :  { %2201 = vmatprep.subr.bf16.mxu0 %v3874_v27 }
 0x443   :  { %2202 = vmatpush1.bf16.msra.mxu0 %v3739_v3 }
 0x4e1   :  { %v1708_v54 = vpop.f32.mrb[8].mxu0 }
 0x4e2   :  { %v1738_v0 = vmul.f32 %v1731_v45, %v1708_v54  ;;  %v1710_v63 = vpop.f32.mrb[9].mxu0 }
 0x4e3   :  { %v1739_v17 = vmul.f32 %v1735_v12, %v1710_v63  ;;  %v1712_v50 = vpop.f32.mrb[10].mxu0 }
 0x4e4   :  { %v1757_v52 = vadd.f32 %v1750_v35, %v1738_v0  ;;  %v1740_v55 = vmul.f32 %v1731_v45, %v1712_v50  ;;  %v1714_v57 = vpop.f32.mrb[11].mxu0 }
 0x4e5   :  { %v1758_v16 = vadd.f32 %v1754_v58, %v1739_v17  ;;  %v1741_v38 = vmul.f32 %v1735_v12, %v1714_v57 }
 0x4e6   :  { %v1763_v9 = vmax.f32 %v1757_v52, 0.0  ;;  %v1759_v2 = vadd.f32 %v1750_v35, %v1740_v55 }
 0x4e7   :  { %v1764_v7 = vmax.f32 %v1758_v16, 0.0  ;;  %v1760_v18 = vadd.f32 %v1754_v58, %v1741_v38 }
 0x4e8   :  { %v4286_v14 = vmul.f32 %v3991_v4, %v1763_v9  ;;  %v1765_v34 = vmax.f32 %v1759_v2, 0.0 }
 0x4e9   :  { %v1770_v15 = vmul.f32 %v3991_v4, %v1764_v7  ;;  %v1766_v20 = vmax.f32 %v1760_v18, 0.0  ;;  %v1718_v37 = vpop.f32.mrb[12].mxu0 }
 0x4ea   :  { %1775 = vst [vmem:[#allocation2 + $0x10] sm:$0xff] %v4286_v14  ;;  %v4291_v36 = vmul.f32 %v3994_v8, %v1765_v34  ;;  %v1742_v40 = vmul.f32 %v1731_v45, %v1718_v37  ;;  %v1720_v21 = vpop.f32.mrb[13].mxu0 }
 0x4eb   :  { %1776 = vst.msk [vmem:[#allocation2 + $0x18] sm:$0xff] %vm47_vm7, %v1770_v15  ;;  %v1772_v22 = vmul.f32 %v3994_v8, %v1766_v20  ;;  %v1743_v59 = vmul.f32 %v1735_v12, %v1720_v21  ;;  %v1722_v5 = vpop.f32.mrb[14].mxu0  ;;  %v3736_v8 = vld [vmem:[#allocation3 + $0x4d0] ss:$8 sps:$4 sm:$0xff]  }
 0x4ec   :  { %1777 = vst [vmem:[#allocation2 + $0x20] sm:$0xff] %v4291_v36  ;;  %v1761_v48 = vadd.f32 %v1750_v35, %v1742_v40  ;;  %v1723_v56 = vpop.f32.mrb[15].mxu0  ;;  %v1873_v4 = vpack.c.bf16 %v4291_v36, %v4286_v14  ;;  %3232 = vmatprep.subr.bf16.mxu1 %v3736_v8  ;;  %v1802_v29 = vrot.slane %v4291_v36, 1  ;;  %v1837_v63 = vrot.slane %v4291_v36, 2 }
 0x4ed   :  { %1778 = vst.msk [vmem:[#allocation2 + $0x28] sm:$0xff] %vm47_vm7, %v1772_v22  ;;  %v1762_v23 = vadd.f32 %v1754_v58, %v1743_v59  ;;  %3233 = vmatpush3.bf16.msra.mxu1 %v3737_v42 }
 0x4ee   :  { %v1767_v24 = vmax.f32 %v1761_v48, 0.0 }
 0x4ef   :  { %v1768_v26 = vmax.f32 %v1762_v23, 0.0 }
 0x4f0   :  { %v1773_v28 = vmul.f32 %v4006_v30, %v1767_v24 }
 0x4f1   :  { %v1774_v31 = vmul.f32 %v4006_v30, %v1768_v26  ;;  %v1787_v46 = vld [vmem:[#allocation2 + $0x10] sm:$0xfe] }
 0x4f2   :  { %1779 = vst [vmem:[#allocation2 + $0x30] sm:$0xf] %v1773_v28  ;;  %v1791_v19 = vld [vmem:[#allocation2 + $0x10] sm:$0xfc]  ;;  %v1801_v39 = vrot.slane %v1787_v46, 1  ;;  %v1782_v37 = vld [vmem:[#allocation2 + $0x18] sm:$0xff] }
 0x4f3   :  { %1780 = vst.msk [vmem:[#allocation2 + $0x38] sm:$0xf] %vm56_vm8, %v1774_v31  ;;  %v1788_v30 = vld [vmem:[#allocation2 + $0x18] sm:$0xfe]  ;;  %v1836_v12 = vrot.slane %v1791_v19, 2  ;;  %vm2314_vm8 = vcmask 1042432  }
 0x4f4   :  { %v1784_v32 = vld [vmem:[#allocation2 + $0x28] sm:$0xff]  ;;  %v1792_v60 = vld [vmem:[#allocation2 + $0x18] sm:$0xfc]  ;;  %v1804_v53 = vrot.slane %v1788_v30, 1  ;;  %v1803_v44 = vsel %vm143_vm2, %v1801_v39, %v1802_v29 }
 0x4f5   :  { %v1805_v41 = vrot.slane %v1784_v32, 1  ;;  %v1840_v10 = vrot.slane %v1784_v32, 2  ;;  %v1839_v35 = vrot.slane %v1792_v60, 2  ;;  %v1838_v57 = vsel %vm163_vm3, %v1836_v12, %v1837_v63  ;;  %v3749_v12 = vld [vmem:[#allocation3 + $0x750] ss:$8 sps:$4 sm:$0xff]  }
 0x4f7   :  { %v1806_v58 = vsel %vm143_vm2, %v1804_v53, %v1805_v41  ;;  %v1841_v50 = vsel %vm163_vm3, %v1839_v35, %v1840_v10  ;;  %v3740_v53 = vld [vmem:[#allocation3 + $0x640] ss:$8 sps:$4 sm:$0xff]  }
 0x4f8   :  { %v3479_v16 = vpack.i.bf16 %v1841_v50, %v1838_v57  ;;  %3246 = vmatprep.subr.bf16.mxu1 %v3740_v53  ;;  %v3744_v35 = vld [vmem:[#allocation3 + $0x660] ss:$8 sps:$4 sm:$0xff]   ;;  %v3757_v50 = vld [vmem:[#allocation3 + $0x770] ss:$8 sps:$4 sm:$0xff]  }
 0x4f9   :  { %v1789_v61 = vld [vmem:[#allocation2 + $0x30] sm:$0x1f]  ;;  %v3759_v57 = vld [vmem:[#allocation3 + $0x6f0] ss:$8 sps:$4 sm:$0xff]  }
 0x4fa   :  { %v1793_v62 = vld [vmem:[#allocation2 + $0x30] sm:$0x3f]  ;;  %v1807_v6 = vrot.slane %v1789_v61, 1  ;;  %v1790_v25 = vld [vmem:[#allocation2 + $0x38] sm:$0x1f] }
 0x4fb   :  { %v1794_v11 = vld [vmem:[#allocation2 + $0x38] sm:$0x3f]  ;;  %v1809_v1 = vrot.slane %v1790_v25, 1  ;;  %v1842_v13 = vrot.slane %v1793_v62, 2  ;;  %v1785_v62 = vld [vmem:[#allocation2 + $0x30] sm:$0xf] }
 0x4fc   :  { %v1844_v43 = vrot.slane %v1794_v11, 2  ;;  %v1808_v45 = vsel %vm143_vm2, %v1802_v29, %v1807_v6  ;;  %v1786_v61 = vld [vmem:[#allocation2 + $0x38] sm:$0xf]  ;;  %v1877_v25 = vpack.c.bf16 %v1785_v62, %v1785_v62  ;;  %v3767_v53 = vld [vmem:[#allocation3 + $0x710] ss:$8 sps:$4 sm:$0xff]  }
 0x4fd   :  { %v3474_v54 = vpack.i.bf16 %v1808_v45, %v1803_v44  ;;  %v1810_v0 = vsel %vm143_vm2, %v1805_v41, %v1809_v1  ;;  %v1843_v52 = vsel %vm163_vm3, %v1837_v63, %v1842_v13  ;;  %v3494_v9 = vpack.i.bf16 %v1809_v1, %v1807_v6  ;;  %v3741_v1 = vld [vmem:[#allocation3 + $0x5c0] ss:$8 sps:$4 sm:$0xff]   ;;  %v3743_v45 = vld [vmem:[#allocation3 + $0x5d0] ss:$8 sps:$4 sm:$0xff]  }
 0x4fe   :  { %v3484_v17 = vpack.i.bf16 %v1810_v0, %v1806_v58  ;;  %v1845_v55 = vsel %vm163_vm3, %v1840_v10, %v1844_v43  ;;  %v3499_v2 = vpack.i.bf16 %v1844_v43, %v1842_v13  ;;  %v3742_v13 = vld [vmem:[#allocation3 + $0x650] ss:$8 sps:$4 sm:$0xff]   ;;  %v3745_v43 = vld [vmem:[#allocation3 + $0x740] ss:$8 sps:$4 sm:$0xff]  }
 0x4ff   :  { %3475 = vrot.lane.b32.xlu0 %v3474_v54, %s3875_s22  ;;  %v3489_v38 = vpack.i.bf16 %v1845_v55, %v1843_v52  ;;  %v3747_v44 = vld [vmem:[#allocation3 + $0x6c0] ss:$8 sps:$4 sm:$0xff]   ;;  %3274 = vmatprep.subr.bf16.mxu0 %v3745_v43  ;;  %v3751_v54 = vld [vmem:[#allocation3 + $0x6d0] ss:$8 sps:$4 sm:$0xff]  }
 0x500   :  { %3485 = vrot.lane.b32.xlu1 %v3484_v17, %s3875_s22  ;;  %v3753_v58 = vld [vmem:[#allocation3 + $0x760] ss:$8 sps:$4 sm:$0xff]   ;;  %v3748_v63 = vld [vmem:[#allocation3 + $0x670] ss:$8 sps:$4 sm:$0xff]  }
 0x501   :  { %v3746_v0 = vld [vmem:[#allocation3 + $0x5e0] ss:$8 sps:$4 sm:$0xff]   ;;  %v3750_v52 = vld [vmem:[#allocation3 + $0x5f0] ss:$8 sps:$4 sm:$0xff]  }
 0x502   :  { %v3755_v17 = vld [vmem:[#allocation3 + $0x6e0] ss:$8 sps:$4 sm:$0xff]  }
 0x503   :  { %3480 = vrot.lane.b32.xlu0 %v3479_v16, %s3876_s23  ;;  %v3752_v55 = vld [vmem:[#allocation3 + $0x680] ss:$8 sps:$4 sm:$0xff]  }
 0x504   :  { %3490 = vrot.lane.b32.xlu1 %v3489_v38, %s3876_s23  ;;  %v3761_v16 = vld [vmem:[#allocation3 + $0x780] ss:$8 sps:$4 sm:$0xff]  }
 0x505   :  { %v3754_v38 = vld [vmem:[#allocation3 + $0x600] ss:$8 sps:$4 sm:$0xff]  }
 0x506   :  { %v3768_v43 = vld [vmem:[#allocation3 + $0x7a0] ss:$8 sps:$4 sm:$0xff]  }
 0x507   :  { %3495 = vrot.lane.b32.xlu0 %v3494_v9, %s3875_s22  ;;  %v3756_v9 = vld [vmem:[#allocation3 + $0x690] ss:$8 sps:$4 sm:$0xff]  }
 0x508   :  { %3500 = vrot.lane.b32.xlu1 %v3499_v2, %s3876_s23  ;;  %v3763_v2 = vld [vmem:[#allocation3 + $0x700] ss:$8 sps:$4 sm:$0xff]  }
 0x571   :  { %v3476_v7 = vpop.permute.xlu0 %3475 }
 0x572   :  { %v3478_v18 = vunpack.i.h.bf16 %v3476_v7  ;;  %v3477_v34 = vunpack.i.l.bf16 %v3476_v7  ;;  %v3486_v15 = vpop.permute.xlu1 %3485  ;;  %v3758_v7 = vld [vmem:[#allocation3 + $0x610] ss:$8 sps:$4 sm:$0xff]  }
 0x573   :  { %v3487_v20 = vunpack.i.l.bf16 %v3486_v15  ;;  %v3488_v40 = vunpack.i.h.bf16 %v3486_v15 }
 0x574   :  { %v1867_v21 = vsel %vm47_vm7, %v1782_v37, %v3477_v34  ;;  %v1868_v22 = vsel %vm47_vm7, %v1784_v32, %v3478_v18 }
 0x575   :  { %v3481_v59 = vpop.permute.xlu0 %3480  ;;  %v1874_v5 = vpack.c.bf16 %v1868_v22, %v1867_v21  ;;  %v1823_v24 = vsel %vm47_vm7, %v3477_v34, %v3487_v20  ;;  %v1824_v31 = vsel %vm47_vm7, %v3478_v18, %v3488_v40  ;;  %v3760_v18 = vld [vmem:[#allocation3 + $0x6a0] ss:$8 sps:$4 sm:$0xff]  }
 0x576   :  { %v3483_v48 = vunpack.i.h.bf16 %v3481_v59  ;;  %v3482_v56 = vunpack.i.l.bf16 %v3481_v59  ;;  %v3491_v23 = vpop.permute.xlu1 %3490  ;;  %v3762_v34 = vld [vmem:[#allocation3 + $0x620] ss:$8 sps:$4 sm:$0xff]  }
 0x577   :  { %v3493_v26 = vunpack.i.h.bf16 %v3491_v23  ;;  %v3492_v28 = vunpack.i.l.bf16 %v3491_v23  ;;  %2159 = vmatprep.mubr.bf16.mxu1 %v1874_v5  ;;  %v2223_v5 = vld [vmem:[#allocation6 + $0x6] ss:$0 sm:$0xff]  ;;  %v2227_v23 = vld [vmem:[#allocation6 + $0x7] ss:$0 sm:$0xff] }
 0x578   :  { %v1858_v33 = vsel %vm439_vm0, %v3482_v56, %v3483_v48  ;;  %v1870_v8 = vsel %vm439_vm0, %v1823_v24, %v3482_v56  ;;  %2160 = vmatmul.mubr.bf16.vlgmr.msra.gmra.mrb[8].mxu1 %v1873_v4 }
 0x579   :  { %v1859_v42 = vsel %vm439_vm0, %v3492_v28, %v3493_v26  ;;  %v1871_v46 = vsel %vm439_vm0, %v1824_v31, %v3492_v28  ;;  %v3496_v32 = vpop.permute.xlu0 %3495  ;;  %3247 = vmatpush3.bf16.msra.mxu1 %v3741_v1 }
 0x57a   :  { %v1875_v51 = vpack.c.bf16 %v1871_v46, %v1870_v8  ;;  %v1876_v29 = vpack.c.bf16 %v1859_v42, %v1858_v33  ;;  %v3498_v19 = vunpack.i.h.bf16 %v3496_v32  ;;  %v3497_v39 = vunpack.i.l.bf16 %v3496_v32  ;;  %v3501_v30 = vpop.permute.xlu1 %3500  ;;  %3248 = vmatprep.subr.bf16.mxu1 %v3742_v13 }
 0x57b   :  { %v3503_v41 = vunpack.i.h.bf16 %v3501_v30  ;;  %v3502_v60 = vunpack.i.l.bf16 %v3501_v30 }
 0x57c   :  { %3168 = vmatprep.mubr.msk.bf16.mxu0 %vm902_vm1, %v1876_v29  ;;  %v1869_v3 = vsel %vm47_vm7, %v1786_v61, %v3497_v39  ;;  %v1825_v14 = vsel %vm47_vm7, %v3497_v39, %v3498_v19 }
 0x57d   :  { %v1860_v36 = vsel %vm439_vm0, %v3502_v60, %v3503_v41  ;;  %2208 = vmatmul.mubr.bf16.vlgmr.msra.gmra.mrb[16].mxu0 %v1875_v51  ;;  %v1878_v4 = vpack.c.bf16 %v1869_v3, %v1869_v3  ;;  %v1872_v10 = vsel %vm439_vm0, %v1825_v14, %v3502_v60  ;;  %3249 = vmatpush3.bf16.msra.mxu1 %v3743_v45 }
 0x57e   :  { %v1880_v6 = vpack.c.bf16 %v1860_v36, %v1860_v36  ;;  %v1879_v11 = vpack.c.bf16 %v1872_v10, %v1872_v10  ;;  %3275 = vmatpush3.bf16.msra.mxu0 %v3747_v44  ;;  %3250 = vmatprep.subr.bf16.mxu1 %v3744_v35  ;;  %v4341_v44 = vld [vmem:[#allocation3 + $0x7c0] ss:$8 sps:$4 sm:$0xff]  }
 0x57f   :  { %2167 = vmatprep.mubr.bf16.mxu1 %v1878_v4  ;;  %3276 = vmatprep.subr.bf16.mxu0 %v3749_v12  ;;  %v3770_v35 = vld [vmem:[#allocation3 + $0x720] ss:$8 sps:$4 sm:$0xff]  }
 0x580   :  { %2168 = vmatmul.mubr.bf16.gmra.mrb[12].mxu1 %v1877_v25  ;;  %3169 = vmatprep.mubr.msk.bf16.mxu0 %vm902_vm1, %v1880_v6  ;;  %v3765_v6 = vld [vmem:[#allocation3 + $0x790] ss:$8 sps:$4 sm:$0xff]  }
 0x581   :  { %3251 = vmatpush3.bf16.msra.mxu1 %v3746_v0  ;;  %v3764_v25 = vld [vmem:[#allocation3 + $0x6b0] ss:$8 sps:$4 sm:$0xff]  }
 0x582   :  { %3277 = vmatpush3.bf16.msra.mxu0 %v3751_v54  ;;  %3252 = vmatprep.subr.bf16.mxu1 %v3748_v63 }
 0x583   :  { %3278 = vmatprep.subr.bf16.mxu0 %v3753_v58 }
 0x585   :  { %2216 = vmatmul.mubr.bf16.gmra.mrb[20].mxu0 %v1879_v11  ;;  %3253 = vmatpush3.bf16.msra.mxu1 %v3750_v52  ;;  %v3766_v11 = vld [vmem:[#allocation3 + $0x630] ss:$8 sps:$4 sm:$0xff]  }
 0x586   :  { %3279 = vmatpush3.bf16.msra.mxu0 %v3755_v17  ;;  %3254 = vmatprep.subr.bf16.mxu1 %v3752_v55 }
 0x587   :  { %3280 = vmatprep.subr.bf16.mxu0 %v3757_v50 }
 0x589   :  { %3255 = vmatpush3.bf16.msra.mxu1 %v3754_v38 }
 0x58a   :  { %3281 = vmatpush3.bf16.msra.mxu0 %v3759_v57  ;;  %3256 = vmatprep.subr.bf16.mxu1 %v3756_v9 }
 0x58b   :  { %3282 = vmatprep.subr.bf16.mxu0 %v3761_v16 }
 0x58d   :  { %3257 = vmatpush3.bf16.msra.mxu1 %v3758_v7  ;;  %v3771_v7 = vld [vmem:[#allocation3 + $0x7b0] ss:$8 sps:$4 sm:$0xff]  }
 0x58e   :  { %3283 = vmatpush3.bf16.msra.mxu0 %v3763_v2  ;;  %3258 = vmatprep.subr.bf16.mxu1 %v3760_v18 }
 0x58f   :  { %3284 = vmatprep.subr.bf16.mxu0 %v3765_v6 }
 0x591   :  { %3259 = vmatpush3.bf16.msra.mxu1 %v3762_v34 }
 0x592   :  { %3260 = vmatprep.subr.bf16.mxu1 %v3764_v25  ;;  %3285 = vmatpush3.bf16.msra.mxu0 %v3767_v53 }
 0x593   :  { %3286 = vmatprep.subr.bf16.mxu0 %v3768_v43 }
 0x595   :  { %3261 = vmatpush3.bf16.msra.mxu1 %v3766_v11 }
 0x596   :  { %3313 = vmatprep.subr.bf16.mxu1 %v4341_v44  ;;  %3287 = vmatpush3.bf16.msra.mxu0 %v3770_v35 }
 0x597   :  { %3288 = vmatprep.subr.bf16.mxu0 %v3771_v7 }
 0x64b   :  { %v3234_v15 = vpop.f32.mrb[8].mxu1 }
 0x64c   :  { %v3235_v20 = vpop.f32.mrb[9].mxu1 }
 0x64d   :  { %v3236_v37 = vadd.f32 %v3235_v20, %v3234_v15  ;;  %v3237_v40 = vpop.f32.mrb[10].mxu1  ;;  %v3773_v15 = vld [vmem:[#allocation3 + $0x730] ss:$8 sps:$4 sm:$0xff]  }
 0x64e   :  { %v3238_v21 = vpop.f32.mrb[11].mxu1  ;;  %3289 = vmatpush3.bf16.msra.mxu0 %v3773_v15 }
 0x64f   :  { %v3239_v22 = vadd.f32 %v3238_v21, %v3237_v40 }
 0x650   :  { %v2209_v59 = vpop.f32.mrb[16].mxu0 }
 0x651   :  { %v2210_v48 = vadd.f32 %v3236_v37, %v2209_v59  ;;  %v2211_v56 = vpop.f32.mrb[17].mxu0 }
 0x652   :  { %v2212_v24 = vpop.f32.mrb[18].mxu0 }
 0x653   :  { %v2224_v26 = vmul.f32 %v2223_v5, %v2210_v48  ;;  %v2213_v28 = vadd.f32 %v3239_v22, %v2212_v24  ;;  %v3240_v31 = vpop.f32.mrb[12].mxu1  ;;  %v2214_v33 = vpop.f32.mrb[19].mxu0  ;;  %v2250_v24 = vld [vmem:[#allocation2 + $0x40] sm:$0x1] }
 0x654   :  { %v3241_v8 = vpop.f32.mrb[13].mxu1  ;;  %v2320_v33 = vrot.slane %v2250_v24, 5 }
 0x655   :  { %v2228_v42 = vadd.f32 %v2227_v23, %v2224_v26  ;;  %v2225_v46 = vmul.f32 %v2223_v5, %v2213_v28  ;;  %v3242_v32 = vadd.f32 %v3241_v8, %v3240_v31  ;;  %v3243_v51 = vpop.f32.mrb[14].mxu1 }
 0x656   :  { %v3244_v29 = vpop.f32.mrb[15].mxu1 }
 0x657   :  { %v2231_v19 = vmax.f32 %v2228_v42, 0.0  ;;  %v2229_v39 = vadd.f32 %v2227_v23, %v2225_v46 }
 0x658   :  { %v2217_v30 = vpop.f32.mrb[20].mxu0 }
 0x659   :  { %2234 = vst.msk [vmem:[#allocation2 + $0x10] sm:$0xff] %vm902_vm1, %v2231_v19  ;;  %v2232_v41 = vmax.f32 %v2229_v39, 0.0  ;;  %v2218_v60 = vadd.f32 %v3242_v32, %v2217_v30  ;;  %v2219_v61 = vpop.f32.mrb[21].mxu0 }
 0x65a   :  { %v2220_v62 = vpop.f32.mrb[22].mxu0 }
 0x65b   :  { %2235 = vst.msk [vmem:[#allocation2 + $0x20] sm:$0xff] %vm902_vm1, %v2232_v41  ;;  %v2226_v3 = vmul.f32 %v2223_v5, %v2218_v60  ;;  %v2221_v14 = vpop.f32.mrb[23].mxu0 }
 0x65d   :  { %v2230_v36 = vadd.f32 %v2227_v23, %v2226_v3 }
 0x65f   :  { %v2233_v4 = vmax.f32 %v2230_v36, 0.0 }
 0x660   :  { %v2243_v1 = vld [vmem:[#allocation2 + $0x10] sm:$0xfc] }
 0x661   :  { %2237 = vst.msk [vmem:[#allocation2 + $0x30] sm:$0xf] %vm2236_vm5, %v2233_v4  ;;  %v2241_v13 = vld [vmem:[#allocation2 + $0x10] sm:$0xfe]  ;;  %v2270_v0 = vrot.slane %v2243_v1, 2 }
 0x662   :  { %v4339_v10 = vld [vmem:[#allocation2 + $0x20] sm:$0xff]  ;;  %v2254_v17 = vrot.slane %v2241_v13, 1  ;;  %v2249_v52 = vld [vmem:[#allocation2 + $0x10] sm:$0xe0] }
 0x663   :  { %v2271_v45 = vrot.slane %v4339_v10, 2  ;;  %v2255_v12 = vrot.slane %v4339_v10, 1  ;;  %v2316_v55 = vrot.slane %v4339_v10, 5  ;;  %v2315_v20 = vrot.slane %v2249_v52, 5  ;;  %v2245_v40 = vld [vmem:[#allocation2 + $0x10] sm:$0xf8] }
 0x664   :  { %v2288_v59 = vrot.slane %v4339_v10, 3  ;;  %v2287_v48 = vrot.slane %v2245_v40, 3  ;;  %v2238_v39 = vld [vmem:[#allocation2 + $0x10] sm:$0xff]  ;;  %v2305_v6 = vrot.slane %v4339_v10, 4  ;;  %v3772_v1 = vld [vmem:[#allocation3 + $0x7d0] ss:$8 sps:$4 sm:$0xff]  }
 0x665   :  { %v2272_v16 = vsel %vm163_vm3, %v2270_v0, %v2271_v45  ;;  %v2256_v9 = vsel %vm143_vm2, %v2254_v17, %v2255_v12  ;;  %v2317_v22 = vsel %vm2314_vm8, %v2315_v20, %v2316_v55  ;;  %v2247_v62 = vld [vmem:[#allocation2 + $0x10] sm:$0xf0] }
 0x666   :  { %v2304_v13 = vrot.slane %v2247_v62, 4 }
 0x668   :  { %v2244_v54 = vld [vmem:[#allocation2 + $0x30] sm:$0x3f] }
 0x669   :  { %v2242_v58 = vld [vmem:[#allocation2 + $0x30] sm:$0x1f]  ;;  %v2273_v63 = vrot.slane %v2244_v54, 2 }
 0x66a   :  { %v2257_v50 = vrot.slane %v2242_v58, 1  ;;  %v2246_v57 = vld [vmem:[#allocation2 + $0x30] sm:$0x7f] }
 0x66b   :  { %v2274_v38 = vsel %vm163_vm3, %v2271_v45, %v2273_v63  ;;  %v2290_v37 = vrot.slane %v2246_v57, 3  ;;  %v4352_v21 = vld [vmem:[#allocation2 + $0x30] sm:$0xff]  ;;  %vm2303_vm3 = vcmask 1043456  }
 0x66c   :  { %v2258_v2 = vsel %vm143_vm2, %v2255_v12, %v2257_v50  ;;  %v3509_v18 = vpack.i.bf16 %v2274_v38, %v2272_v16  ;;  %v3514_v5 = vpack.i.bf16 %v2317_v22, %v2257_v50  ;;  %vm2286_vm2 = vcmask 1044480   ;;  %v3774_v50 = vld [vmem:[#allocation3 + $0x7e0] ss:$8 sps:$4 sm:$0xff]   ;;  %v3792_v22 = vld [vmem:[#allocation2] sm:$0xff] }
 0x66d   :  { %v3504_v34 = vpack.i.bf16 %v2258_v2, %v2256_v9  ;;  %v2291_v56 = vsel %vm2286_vm2, %v2288_v59, %v2290_v37  ;;  %v2318_v23 = vrot.slane %v4352_v21, 5  ;;  %v2289_v26 = vsel %vm2286_vm2, %v2287_v48, %v2288_v59  ;;  %v2240_v52 = vld [vmem:[#allocation2 + $0x30] sm:$0xf] }
 0x66e   :  { %3510 = vrot.lane.b32.xlu1 %v3509_v18, %s3876_s23  ;;  %v3519_v28 = vpack.i.bf16 %v2291_v56, %v2289_v26  ;;  %v2307_v25 = vrot.slane %v4352_v21, 4  ;;  %v2306_v12 = vsel %vm2303_vm3, %v2304_v13, %v2305_v6  ;;  %v3775_v18 = vld [vmem:[#allocation3 + $0x7f0] ss:$8 sps:$4 sm:$0xff]   ;;  %v3776_v59 = vld [vmem:[#allocation3 + $0x800] ss:$8 sps:$4 sm:$0xff]  }
 0x66f   :  { %3505 = vrot.lane.b32.xlu0 %v3504_v34, %s3877_s24  ;;  %v2319_v31 = vsel %vm2314_vm8, %v2316_v55, %v2318_v23  ;;  %v2321_v8 = vsel %vm2314_vm8, %v2318_v23, %v2320_v33  ;;  %v3778_v48 = vld [vmem:[#allocation3 + $0x820] ss:$8 sps:$4 sm:$0xff]   ;;  %v3779_v56 = vld [vmem:[#allocation3 + $0x830] ss:$8 sps:$4 sm:$0xff]  }
 0x670   :  { %v2308_v35 = vsel %vm2303_vm3, %v2305_v6, %v2307_v25  ;;  %v2788_v6 = vld [vmem:[#allocation6 + $0x10] ss:$0 sm:$0xff] }
 0x672   :  { %2279 = vrot.lane.b32.xlu1 %v2273_v63, %s3876_s23 }
 0x673   :  { %3515 = vrot.lane.b32.xlu0 %v3514_v5, %s3877_s24  ;;  %v3777_v5 = vld [vmem:[#allocation3 + $0x810] ss:$8 sps:$4 sm:$0xff]  }
 0x676   :  { %3520 = vrot.lane.b32.xlu1 %v3519_v28, %s3875_s22 }
 0x677   :  { %2324 = vrot.lane.b32.xlu0 %v2319_v31, %s3877_s24 }
 0x67a   :  { %2296 = vrot.lane.b32.xlu1 %v2290_v37, %s3875_s22 }
 0x67b   :  { %2326 = vrot.lane.b32.xlu0 %v2321_v8, %s3877_s24 }
 0x6e0   :  { %v3511_v42 = vpop.permute.xlu1 %3510 }
 0x6e1   :  { %v3506_v46 = vpop.permute.xlu0 %3505  ;;  %v3513_v32 = vunpack.i.h.bf16 %v3511_v42  ;;  %v3512_v51 = vunpack.i.l.bf16 %v3511_v42 }
 0x6e2   :  { %v3508_v29 = vunpack.i.h.bf16 %v3506_v46  ;;  %v3507_v19 = vunpack.i.l.bf16 %v3506_v46 }
 0x6e4   :  { %v2332_v30 = vsel %vm902_vm1, %v4339_v10, %v3508_v29  ;;  %v2331_v41 = vsel %vm902_vm1, %v2238_v39, %v3507_v19  ;;  %v2334_v60 = vsel %vm439_vm0, %v3507_v19, %v3512_v51  ;;  %v2335_v61 = vsel %vm439_vm0, %v3508_v29, %v3513_v32  ;;  %v2280_v14 = vpop.permute.xlu1 %2279 }
 0x6e5   :  { %v2343_v3 = vpack.c.bf16 %v2332_v30, %v2331_v41  ;;  %v3516_v36 = vpop.permute.xlu0 %3515  ;;  %v2344_v4 = vpack.c.bf16 %v2335_v61, %v2334_v60 }
 0x6e6   :  { %v3518_v11 = vunpack.i.h.bf16 %v3516_v36  ;;  %v3517_v53 = vunpack.i.l.bf16 %v3516_v36 }
 0x6e7   :  { %2679 = vmatprep.mubr.bf16.mxu1 %v2344_v4 }
 0x6e8   :  { %2680 = vmatmul.mubr.bf16.vlgmr.msra.gmra.mrb[16].mxu1 %v2343_v3  ;;  %v2336_v43 = vsel %vm439_vm0, %v3517_v53, %v2280_v14  ;;  %v3521_v45 = vpop.permute.xlu1 %3520  ;;  %v2340_v63 = vsel %vm902_vm1, %v2306_v12, %v3518_v11  ;;  %v2333_v57 = vsel %vm902_vm1, %v2240_v52, %v3517_v53  ;;  %v3782_v52 = vld [vmem:[#allocation3 + $0x844] ss:$8 sps:$4 sm:$0xff]  }
 0x6e9   :  { %3314 = vmatpush3.bf16.msra.mxu1 %v4341_v44  ;;  %v2325_v54 = vpop.permute.xlu0 %2324  ;;  %v2349_v58 = vpack.c.bf16 %v2336_v43, %v2336_v43  ;;  %v3523_v0 = vunpack.i.h.bf16 %v3521_v45  ;;  %v3522_v10 = vunpack.i.l.bf16 %v3521_v45  ;;  %v2348_v7 = vpack.c.bf16 %v2333_v57, %v2333_v57  ;;  %v3785_v57 = vld [vmem:[#allocation3 + $0x854] ss:$8 sps:$4 sm:$0xff]  }
 0x6ea   :  { %v2341_v17 = vsel %vm902_vm1, %v2308_v35, %v2325_v54  ;;  %3315 = vmatprep.subr.bf16.mxu1 %v3772_v1  ;;  %v2347_v20 = vpack.c.bf16 %v2325_v54, %v3518_v11 }
 0x6eb   :  { %v2346_v55 = vpack.c.bf16 %v2341_v17, %v2340_v63  ;;  %2687 = vmatprep.mubr.bf16.mxu1 %v2349_v58  ;;  %v2337_v44 = vsel %vm47_vm7, %v3512_v51, %v3522_v10  ;;  %v2338_v16 = vsel %vm47_vm7, %v3513_v32, %v3523_v0 }
 0x6ec   :  { %v2345_v38 = vpack.c.bf16 %v2338_v16, %v2337_v44  ;;  %v2297_v34 = vpop.permute.xlu1 %2296  ;;  %v3783_v44 = vld [vmem:[#allocation3 + $0x850] ss:$8 sps:$4 sm:$0xff]  }
 0x6ed   :  { %3316 = vmatpush3.bf16.msra.mxu1 %v3772_v1  ;;  %v2327_v9 = vpop.permute.xlu0 %2326  ;;  %2726 = vmatprep.mubr.bf16.mxu0 %v2346_v55  ;;  %v2339_v37 = vsel %vm47_vm7, %v2280_v14, %v2297_v34  ;;  %v2791_v1 = vld [vmem:[#allocation6 + $0x11] ss:$0 sm:$0xff]  ;;  %v3780_v55 = vld [vmem:[#allocation3 + $0x840] ss:$8 sps:$4 sm:$0xff]   ;;  %v2880_v16 = vld [vmem:[#allocation6 + $0x12] ss:$0 sm:$0xff] }
 0x6ee   :  { %v2342_v2 = vsel %vm902_vm1, %v2307_v25, %v2327_v9  ;;  %3317 = vmatprep.subr.bf16.mxu1 %v3774_v50  ;;  %2727 = vmatmul.mubr.bf16.vlgmr.msra.gmra.mrb[24].mxu0 %v2345_v38  ;;  %v2350_v40 = vpack.c.bf16 %v2339_v37, %v2339_v37  ;;  %v2352_v21 = vpack.c.bf16 %v2327_v9, %v2327_v9  ;;  %v2882_v9 = vld [vmem:[#allocation6 + $0x13] ss:$0 sm:$0xff] }
 0x6ef   :  { %v2351_v15 = vpack.c.bf16 %v2342_v2, %v2342_v2 }
 0x6f0   :  { %2688 = vmatmul.mubr.bf16.gmra.mrb[20].mxu1 %v2348_v7 }
 0x6f1   :  { %3318 = vmatpush3.bf16.msra.mxu1 %v3774_v50  ;;  %2734 = vmatprep.mubr.bf16.mxu0 %v2351_v15 }
 0x6f2   :  { %3321 = vmatprep.mubr.msk.bf16.mxu1 %vm439_vm0, %v2347_v20  ;;  %3319 = vmatprep.subr.bf16.mxu1 %v3775_v18 }
 0x6f5   :  { %3320 = vmatpush3.bf16.msra.mxu1 %v3775_v18 }
 0x6f6   :  { %3325 = vmatprep.subr.bf16.mxu1 %v3792_v22  ;;  %2735 = vmatmul.mubr.bf16.gmra.mrb[28].mxu0 %v2350_v40 }
 0x6f8   :  { %3322 = vmatmul.mubr.msk.bf16.vlgmr.msra.gmra.mrb[24].mxu1 %vm439_vm0, %v2352_v21 }
 0x6f9   :  { %3326 = vmatpush3.bf16.msra.mxu1 %v3776_v59  ;;  %3333 = vmatprep.mubr.msk.bf16.mxu1 %vm3878_vm4, %v3792_v22 }
 0x6fa   :  { %3327 = vmatprep.subr.bf16.mxu1 %v3792_v22 }
 0x6fd   :  { %3328 = vmatpush3.bf16.msra.mxu1 %v3777_v5 }
 0x6fe   :  { %3329 = vmatprep.subr.bf16.mxu1 %v3792_v22 }
 0x701   :  { %3330 = vmatpush3.bf16.msra.mxu1 %v3778_v48 }
 0x702   :  { %3331 = vmatprep.subr.bf16.mxu1 %v3792_v22 }
 0x705   :  { %3332 = vmatpush3.bf16.msra.mxu1 %v3779_v56 }
 0x706   :  { %2926 = vmatprep.subr.bf16.mxu1 %v3782_v52 }
 0x7bb   :  { %v3262_v23 = vpop.f32.mrb[16].mxu1 }
 0x7bc   :  { %v3263_v24 = vpop.f32.mrb[17].mxu1 }
 0x7bd   :  { %v3264_v26 = vadd.f32 %v3263_v24, %v3262_v23  ;;  %v3265_v28 = vpop.f32.mrb[18].mxu1 }
 0x7be   :  { %v3266_v31 = vpop.f32.mrb[19].mxu1 }
 0x7bf   :  { %v3267_v33 = vadd.f32 %v3266_v31, %v3265_v28 }
 0x7c1   :  { %v3290_v8 = vpop.f32.mrb[24].mxu0 }
 0x7c2   :  { %v3291_v46 = vpop.f32.mrb[25].mxu0 }
 0x7c3   :  { %v3268_v42 = vpop.f32.mrb[20].mxu1  ;;  %v3292_v32 = vadd.f32 %v3291_v46, %v3290_v8  ;;  %v3293_v29 = vpop.f32.mrb[26].mxu0 }
 0x7c4   :  { %v3269_v51 = vpop.f32.mrb[21].mxu1  ;;  %v3294_v39 = vpop.f32.mrb[27].mxu0 }
 0x7c5   :  { %v3271_v19 = vpop.f32.mrb[22].mxu1  ;;  %v3295_v30 = vadd.f32 %v3294_v39, %v3293_v29  ;;  %v2729_v60 = vadd.f32 %v3292_v32, %v3264_v26 }
 0x7c6   :  { %v3272_v41 = vpop.f32.mrb[23].mxu1 }
 0x7c7   :  { %v2732_v61 = vadd.f32 %v3295_v30, %v3267_v33 }
 0x7c9   :  { %v3296_v62 = vpop.f32.mrb[28].mxu0 }
 0x7ca   :  { %v3297_v3 = vpop.f32.mrb[29].mxu0 }
 0x7cb   :  { %v3323_v14 = vpop.f32.mrb[24].mxu1  ;;  %v3299_v36 = vpop.f32.mrb[30].mxu0 }
 0x7cc   :  { %v2775_v4 = vpop.f32.mrb[25].mxu1  ;;  %v3300_v11 = vpop.f32.mrb[31].mxu0 }
 0x7cd   :  { %v2776_v25 = vadd.f32 %v2775_v4, %v2729_v60  ;;  %v3324_v53 = vpop.f32.mrb[26].mxu1 }
 0x7ce   :  { %v2778_v13 = vpop.f32.mrb[27].mxu1 }
 0x7cf   :  { %v2789_v43 = vmul.f32 %v2788_v6, %v2776_v25  ;;  %v2779_v45 = vadd.f32 %v2778_v13, %v2732_v61 }
 0x7d1   :  { %v2792_v12 = vadd.f32 %v2791_v1, %v2789_v43  ;;  %v2790_v35 = vmul.f32 %v2788_v6, %v2779_v45 }
 0x7d3   :  { %v2794_v54 = vmax.f32 %v2792_v12, 0.0  ;;  %v2793_v58 = vadd.f32 %v2791_v1, %v2790_v35 }
 0x7d5   :  { %v2795_v0 = vmax.f32 %v2793_v58, 0.0  ;;  %v2797_v10 = vrot.slane %v2794_v54, 1 }
 0x7d7   :  { %v2800_v63 = vrot.slane %v2795_v0, 2 }
 0x7d9   :  { %v2803_v17 = vsel %vm2802_vm6, %v2797_v10, %v2800_v63 }
 0x7da   :  { %v2804_v50 = vpack.c.bf16 %v2803_v17, %v2803_v17 }
 0x7dc   :  { %3334 = vmatmul.mubr.msk.bf16.vlgmr.msra.gmra.mrb[28].mxu1 %vm439_vm0, %v2804_v50 }
 0x7dd   :  { %2958 = vmatprep.mubr.bf16.mxu1 %v3874_v27  ;;  %2927 = vmatpush1.bf16.msra.mxu1 %v3780_v55  ;;  %v2891_v27 = vld [vmem:[#allocation6 + $0x14] ss:$8 sm:$0x3] }
 0x7de   :  { %2928 = vmatprep.subr.bf16.mxu1 %v3785_v57  ;;  %v2896_v40 = vrot.slane %v2891_v27, %v3982_v47  ;;  %v2900_v21 = vrot.slane %v2891_v27, %v3984_v49 }
 0x7e1   :  { %2929 = vmatpush1.bf16.msra.mxu1 %v3783_v44 }
 0x8af   :  { %v2874_v38 = vpop.f32.mrb[28].mxu1 }
 0x8b0   :  { %v2881_v2 = vmul.f32 %v2880_v16, %v2874_v38  ;;  %v3335_v7 = vpop.f32.mrb[29].mxu1 }
 0x8b1   :  { %v2877_v18 = vpop.f32.mrb[30].mxu1 }
 0x8b2   :  { %v2883_v34 = vadd.f32 %v2882_v9, %v2881_v2  ;;  %v3336_v15 = vpop.f32.mrb[31].mxu1 }
 0x8b4   :  { %v2884_v20 = vmax.f32 %v2883_v34, 0.0 }
 0x8b6   :  { %v2885_v37 = vpack.c.bf16 %v2884_v20, %v2884_v20 }
 0x8b8   :  { %3217 = vmatmul.mubr.msk.bf16.vlgmr.msra.gmra.mrb[32].mxu1 %vm47_vm7, %v2885_v37 }
 0x98b   :  { %v2960_v22 = vpop.f32.mrb[32].mxu1 }
 0x98c   :  { %v2961_v59 = vadd.f32 %v2960_v22, %v2896_v40  ;;  %v2962_v5 = vpop.f32.mrb[33].mxu1 }
 0x98d   :  { %v2963_v48 = vadd.f32 %v2962_v5, %v2900_v21  ;;  %v2964_v56 = vpop.f32.mrb[34].mxu1 }
 0x98e   :  { %v2965_v23 = vpop.f32.mrb[35].mxu1  ;;  %v2968_v24 = vsel %vm2967_vm9, %v2961_v59, -inf }
 0x98f   :  { %3786 = vtanh.f32 %v2963_v48  ;;  %2969 = vmax.xlane.f32.xlu0 %v2968_v24 }
 0x999   :  { %v3787_v26 = vpop.eup %3786 }
 0x99a   :  { %2983 = vst.msk [vmem:[%s4406_s4] sm:$0x3] %vm2982_vm10, %v3787_v26 }
 0xa1c   :  { %v2970_v47 = vpop.xlane.xlu0 %2969 }
 0xa1d   :  { %v2971_v28 = vsub.f32 %v2961_v59, %v2970_v47 }
 0xa1f   :  { %v2972_v49 = vmul.f32 1.442695, %v2971_v28 }
 0xa21   :  { %3788 = vpow2.f32 %v2972_v49 }
 0xa2b   :  { %v3789_v31 = vpop.eup %3788 }
 0xa2c   :  { %v2974_v33 = vsel %vm2967_vm9, %v3789_v31, 0.0 }
 0xa2d   :  { %2975 = vadd.xlane.f32.xlu1 %v2974_v33 }
 0xaba   :  { %v2976_v8 = vpop.xlane.xlu1 %2975 }
 0xabb   :  { %3790 = vlog2.f32 %v2976_v8 }
 0xac5   :  { %v3791_v42 = vpop.eup %3790 }
 0xac6   :  { %v2978_v46 = vmul.f32 0.6931472, %v3791_v42 }
 0xac8   :  { %v2979_v32 = vsub.f32 %v2971_v28, %v2978_v46 }
 0xaca   :  { %2980 = vst [vmem:[#allocation8] sm:$0x3] %v2979_v32 }
 0xacb   :  { %3848 = shalt.err (!%p3845_p6)
}
 0xacc   :  { %s3849_s5 = scalar_lea.hbm %s4405_s3, 32 }
 0xacd   :  { %p3850_p7 = scmp.ne.s32.totalorder %s4405_s3, %s3849_s5  ;;  %p3853_p8 = scmp.lt.u32.totalorder %s3849_s5, %s4405_s3 }
 0xacf   :  { %p3855_p9 = pnand %p3853_p8, %p3850_p7 }
 0xad1   :  { %3858 = shalt.err (!%p3855_p9)
}
 0xad2   :  { %2993 = dma.vmem_to_hbm [thread:$0]  %s2991_s28, 32, %s4405_s3, [#allocation5]  }
 0xad3   :  { %3863 = dma.done.wait [#allocation5], 32  }
 0xad4   :  { %3864 = vsyncadd [#allocation5], 4294967264 }
 0xad5   :  { %3001 = vsyncpa [#allocation4], 1 }
 0xad6   :  { %3002 = vsyncpa [#allocation7], 1 }
 0xad7   :  { %3003 = vsyncpa [#allocation5], 1 }

</bundles_post_ra>
